<compile_context>
chip_gen: v6e
topology: v6e:2x2x1
jax: 0.10.0
libtpu: 0.0.40
codegen_flags: <defaults>
</compile_context>

<pallas_src>
import functools
import math

import jax
import jax.numpy as jnp
from jax.experimental import pallas as pl
from jax.experimental.pallas import tpu as pltpu


def _attention_pool_kernel(q_ref, k_ref, w_in_ref, b_in_ref, hs_ref, woT_ref,
                           bo_ref, slab_ref, *, num_heads, head_dim):
    # q_ref:    (NB, S, E)  f32   queries for NB batches
    # k_ref:    (NB, T, E)  f32   key/value tokens (value == key in this module)
    # w_in_ref: (E, 3E)     bf16  packed [wq^T | wk^T | wv^T]
    # b_in_ref: (1, 3E)     f32   packed [bq | bk | bv]
    # hs_ref:   (E, E)      f32   block-diagonal ones (head-group reduction)
    # woT_ref:  (E, E)      bf16  out-proj weight, pre-transposed
    # bo_ref:   (1, E)      f32
    # slab_ref: (NB, S, LW) f32   lane-dense packed output [out | attn | 0...]
    NB, S, E = q_ref.shape
    T = k_ref.shape[1]
    D = head_dim
    scale = 1.0 / math.sqrt(D)
    nq = NB * S
    LW = slab_ref.shape[-1]

    # ---- one fused bf16 MXU matmul for the q, k and v input projections ----
    q2 = q_ref[...].reshape(nq, E)
    k2 = k_ref[...].reshape(NB * T, E)
    x = jnp.concatenate([q2, k2], axis=0).astype(jnp.bfloat16)   # (nq+NB*T, E)
    proj = jnp.dot(x, w_in_ref[...], preferred_element_type=jnp.float32)
    proj = proj + b_in_ref[...]                                   # f32

    # Two of these three lane slices start at a non-zero lane offset — with one
    # packed weight that is unavoidable; it costs a couple of XLU rolls total.
    qp = proj[:nq, :E].reshape(NB, S, E)           # query projection
    kp = proj[nq:, E:2 * E].reshape(NB, T, E)      # key projection
    vp = proj[nq:, 2 * E:].reshape(NB, T, E)       # value projection

    # ---- all heads at once, E kept on the lane axis -------------------------
    # prod[b,s,t,e] = qp[b,s,e] * kp[b,t,e]
    prod = qp[:, :, None, :] * kp[:, None, :, :]                  # (NB,S,T,E)
    # Segmented per-head sum over D lanes via the block-diagonal ones matrix.
    # Result: each head's score replicated across its D-lane group.  Kept at
    # f32 HIGHEST because `prod` is an f32 intermediate (bf16 rounding here
    # would perturb the softmax beyond 1e-4).
    sseg = jnp.dot(prod.reshape(nq * T, E), hs_ref[...],
                   precision=jax.lax.Precision.HIGHEST,
                   preferred_element_type=jnp.float32)
    s = sseg.reshape(NB, S, T, E) * scale

    # Softmax over tokens (sublane axis); replication across a head's lane
    # group is free — same vreg count as a compacted (.., T, H) layout.
    s = s - jnp.max(s, axis=2, keepdims=True)
    e = jnp.exp(s)
    denom = jnp.sum(e, axis=2, keepdims=True)
    p = e * pl.reciprocal(denom, approx=False)                    # (NB,S,T,E)

    # Head-averaged attention weights: each head value appears D times on lanes.
    attn_avg = jnp.sum(p, axis=-1) * (1.0 / E)                    # (NB,S,T)

    # attn @ V: thanks to the lane replication this is a plain elementwise
    # product followed by a sublane (token) reduction — exact f32, no per-head
    # slicing, no transposes.
    ctx = jnp.sum(p * vp[:, None, :, :], axis=2)                  # (NB,S,E)

    # ---- single bf16 MXU matmul for the output projection -------------------
    out = jnp.dot(ctx.reshape(nq, E).astype(jnp.bfloat16), woT_ref[...],
                  preferred_element_type=jnp.float32) + bo_ref[...]

    # ---- lane-dense packed output slab (128-wide block -> unmasked writeback)
    slab_ref[...] = jnp.zeros((NB, S, LW), jnp.float32)
    slab_ref[:, :, :E] = out.reshape(NB, S, E)
    slab_ref[:, :, E:E + T] = attn_avg


def pack_attention_params(params, num_heads):
    """One-time parameter packing (hoisted out of the per-call path)."""
    E = params["wq"].shape[0]
    D = E // num_heads
    w_in = jnp.concatenate([params["wq"].T, params["wk"].T, params["wv"].T],
                           axis=1)
    b_in = jnp.concatenate([params["bq"], params["bk"], params["bv"]]
                           ).reshape(1, 3 * E)
    head = jnp.arange(E, dtype=jnp.int32) // D
    head_sum = (head[:, None] == head[None, :]).astype(jnp.float32)
    return {
        "w_in": w_in.astype(jnp.bfloat16),       # bf16 operands -> 1-pass MXU
        "b_in": b_in.astype(jnp.float32),
        "head_sum": head_sum,                    # (E, E) block-diagonal ones
        "woT": params["wo"].T.astype(jnp.bfloat16),
        "bo": params["bo"].reshape(1, E).astype(jnp.float32),
    }


def _num_parallel_steps():
    """1 grid step on single-TensorCore chips (v5e/v6e); 2 balanced 'parallel'
    steps on chips with two TensorCores (v7x, v4/v5p megacore)."""
    try:
        kind = (getattr(jax.devices()[0], "device_kind", "") or "").lower()
    except Exception:
        return 1
    if "v7" in kind or "7x" in kind or "v4" in kind or "v5p" in kind:
        return 2
    return 1


def multimodal_attention_pool(query, key, packed, num_heads, *, value=None,
                              num_steps=None):
    """MultimodalAttentionPool.forward (eval mode) as a Pallas TPU kernel.

    query: (B, S, E); key: (B, T, E); value defaults to key (value=None path).
    Returns (attn_output, info) with info containing 'attention_weights',
    'entropy', 'mask_rate' (CurriculumMasking eval mode).
    """
    if value is not None and value is not key:
        # TODO(synk): distinct value tensors need an un-fused V projection.
        raise NotImplementedError("fused K/V projection assumes value is key")

    B, S, E = query.shape
    T = key.shape[1]
    assert E % num_heads == 0
    if num_steps is None:
        num_steps = _num_parallel_steps()

    LW = ((E + T + 127) // 128) * 128            # lane-dense packed slab width

    # Batch-blocked grid: NB batches per step, NB rounded up to a multiple of 8
    # so in-kernel row concats/slices stay sublane-aligned.
    nb = -(-B // num_steps)
    NB = -(-nb // 8) * 8
    Bp = NB * num_steps
    if Bp != B:
        pad = Bp - B
        query = jnp.pad(query, ((0, pad), (0, 0), (0, 0)))
        key = jnp.pad(key, ((0, pad), (0, 0), (0, 0)))

    kernel = functools.partial(_attention_pool_kernel, num_heads=num_heads,
                               head_dim=E // num_heads)

    grid_spec = pltpu.PrefetchScalarGridSpec(
        num_scalar_prefetch=0,
        grid=(num_steps,),
        in_specs=[
            pl.BlockSpec((NB, S, E), lambda i: (i, 0, 0)),       # queries
            pl.BlockSpec((NB, T, E), lambda i: (i, 0, 0)),       # keys (=values)
            pl.BlockSpec((E, 3 * E), lambda i: (0, 0)),          # packed in-proj W^T
            pl.BlockSpec((1, 3 * E), lambda i: (0, 0)),          # packed in-proj bias
            pl.BlockSpec((E, E), lambda i: (0, 0)),              # head-group matrix
            pl.BlockSpec((E, E), lambda i: (0, 0)),              # out-proj W^T
            pl.BlockSpec((1, E), lambda i: (0, 0)),              # out-proj bias
        ],
        out_specs=pl.BlockSpec((NB, S, LW), lambda i: (i, 0, 0)),
    )

    slab = pl.pallas_call(
        kernel,
        out_shape=jax.ShapeDtypeStruct((Bp, S, LW), jnp.float32),
        grid_spec=grid_spec,
        compiler_params=pltpu.CompilerParams(
            dimension_semantics=("parallel",),
            vmem_limit_bytes=32 * 1024 * 1024,   # working set is KB-scale
        ),
    )(query, key, packed["w_in"], packed["b_in"], packed["head_sum"],
      packed["woT"], packed["bo"])

    out = slab[:B, :, :E]
    attn = slab[:B, :, E:E + T]

    # CurriculumMasking eval path: weights pass through unchanged; report
    # Shannon entropy (clamped to [0, log T]) and zero mask rate.  Computed in
    # the wrapper (trivial XLA VPU work) rather than as a width-1 kernel store.
    safe = jnp.where(attn > 0.0, attn, 1.0)
    entropy = -jnp.sum(jnp.where(attn > 0.0, attn * jnp.log(safe), 0.0), axis=-1)
    entropy = jnp.clip(entropy, 0.0, math.log(float(T)))

    info = {
        "attention_weights": attn,
        "entropy": entropy,
        "mask_rate": jnp.zeros_like(entropy),    # eval-mode curriculum masking
    }
    return out, info


def _reference(query, key, value, params, num_heads):
    """Pure-JAX reference of nn.MultiheadAttention (eval, avg attn weights).

    Mirrors the kernel's matmul numerics: the large projections use bf16
    operands with f32 accumulation (rounding applied to both operands); the
    score / attn@V contractions stay in f32.
    """
    B, S, E = query.shape
    T = key.shape[1]
    D = E // num_heads
    hi = jax.lax.Precision.HIGHEST

    def r(x):  # bf16 operand rounding, matching the kernel's 1-pass MXU dots
        return x.astype(jnp.bfloat16).astype(jnp.float32)

    q = jnp.dot(r(query), r(params["wq"].T), precision=hi) + params["bq"]
    k = jnp.dot(r(key), r(params["wk"].T), precision=hi) + params["bk"]
    v = jnp.dot(r(value), r(params["wv"].T), precision=hi) + params["bv"]
    qh = q.reshape(B, S, num_heads, D).transpose(0, 2, 1, 3)
    kh = k.reshape(B, T, num_heads, D).transpose(0, 2, 1, 3)
    vh = v.reshape(B, T, num_heads, D).transpose(0, 2, 1, 3)
    scores = jnp.einsum("bhsd,bhtd->bhst", qh, kh, precision=hi) / math.sqrt(D)
    p = jax.nn.softmax(scores, axis=-1)
    o = jnp.einsum("bhst,bhtd->bhsd", p, vh, precision=hi)
    o = o.transpose(0, 2, 1, 3).reshape(B, S, E)
    out = jnp.dot(r(o), r(params["wo"].T), precision=hi) + params["bo"]
    avg = p.mean(axis=1)
    safe = jnp.where(avg > 0, avg, 1.0)
    ent = -jnp.sum(jnp.where(avg > 0, avg * jnp.log(safe), 0.0), axis=-1)
    ent = jnp.clip(ent, 0.0, math.log(float(T)))
    return out, avg, ent


if __name__ == "__main__":
    # T=8 modalities, a single fusion query (S=1), embed_dim=32, 4 heads.
    # batch=12 exercises batch-block padding on every generation.
    B, S, T, E, H = 12, 1, 8, 32, 4

    key_root = jax.random.PRNGKey(0)
    kq, kk, kw = jax.random.split(key_root, 3)

    query = jax.random.normal(kq, (B, S, E), dtype=jnp.float32)
    modalities = jax.random.normal(kk, (B, T, E), dtype=jnp.float32)

    wkeys = jax.random.split(kw, 8)
    wscale = 1.0 / math.sqrt(E)
    params = {
        "wq": jax.random.uniform(wkeys[0], (E, E), jnp.float32, -wscale, wscale),
        "wk": jax.random.uniform(wkeys[1], (E, E), jnp.float32, -wscale, wscale),
        "wv": jax.random.uniform(wkeys[2], (E, E), jnp.float32, -wscale, wscale),
        "wo": jax.random.uniform(wkeys[3], (E, E), jnp.float32, -wscale, wscale),
        "bq": jax.random.uniform(wkeys[4], (E,), jnp.float32, -wscale, wscale),
        "bk": jax.random.uniform(wkeys[5], (E,), jnp.float32, -wscale, wscale),
        "bv": jax.random.uniform(wkeys[6], (E,), jnp.float32, -wscale, wscale),
        "bo": jax.random.uniform(wkeys[7], (E,), jnp.float32, -wscale, wscale),
    }

    # Parameter packing hoisted out of the per-call path (done once).
    packed = pack_attention_params(params, H)
    num_steps = _num_parallel_steps()

    pool = jax.jit(functools.partial(multimodal_attention_pool, num_heads=H,
                                     num_steps=num_steps))

    out, info = pool(query, modalities, packed)
    out = jax.block_until_ready(out)
    attn = jax.block_until_ready(info["attention_weights"])
    ent = jax.block_until_ready(info["entropy"])
    mask_rate = jax.block_until_ready(info["mask_rate"])

    ref_out, ref_attn, ref_ent = _reference(query, modalities, modalities,
                                            params, H)
    assert jnp.allclose(out, ref_out, rtol=1e-4, atol=1e-4), "output mismatch"
    assert jnp.allclose(attn, ref_attn, rtol=1e-4, atol=1e-4), "attn mismatch"
    assert jnp.allclose(ent, ref_ent, rtol=1e-4, atol=1e-4), "entropy mismatch"
    assert jnp.all(mask_rate == 0.0), "eval-mode mask_rate must be zero"

    print("KERNEL_OK")
</pallas_src>

<mosaic_0001>
module attributes {stable_mosaic.version = 11 : i64} {
  func.func @_attention_pool_kernel(%arg0: i32, %arg1: memref<16x1x32xf32, #tpu.memory_space<vmem>>, %arg2: memref<16x8x32xf32, #tpu.memory_space<vmem>>, %arg3: memref<32x96xbf16, #tpu.memory_space<vmem>>, %arg4: memref<1x96xf32, #tpu.memory_space<vmem>>, %arg5: memref<32x32xf32, #tpu.memory_space<vmem>>, %arg6: memref<32x32xbf16, #tpu.memory_space<vmem>>, %arg7: memref<1x32xf32, #tpu.memory_space<vmem>>, %arg8: memref<16x1x128xf32, #tpu.memory_space<vmem>>) attributes {dimension_semantics = [#tpu.dimension_semantics<parallel>], iteration_bounds = array<i64: 1>, scalar_prefetch = 0 : i64, scratch_operands = 0 : i64, tpu.core_type = #tpu.core_type<tc>, window_params = [{transform_indices = @transform_0, window_bounds = array<i64: 16, 1, 32>}, {transform_indices = @transform_1, window_bounds = array<i64: 16, 8, 32>}, {pipeline_mode = #tpu.pipeline_mode<synchronous>, transform_indices = @transform_2, window_bounds = array<i64: 32, 96>}, {pipeline_mode = #tpu.pipeline_mode<synchronous>, transform_indices = @transform_3, window_bounds = array<i64: 1, 96>}, {pipeline_mode = #tpu.pipeline_mode<synchronous>, transform_indices = @transform_4, window_bounds = array<i64: 32, 32>}, {pipeline_mode = #tpu.pipeline_mode<synchronous>, transform_indices = @transform_5, window_bounds = array<i64: 32, 32>}, {pipeline_mode = #tpu.pipeline_mode<synchronous>, transform_indices = @transform_6, window_bounds = array<i64: 1, 32>}, {transform_indices = @transform_7, window_bounds = array<i64: 16, 1, 128>}]} {
    %c0 = arith.constant 0 : index
    %c0_0 = arith.constant 0 : index
    %c0_1 = arith.constant 0 : index
    %0 = vector.load %arg1[%c0, %c0_0, %c0_1] : memref<16x1x32xf32, #tpu.memory_space<vmem>>, vector<16x1x32xf32>
    %1 = vector.shape_cast %0 : vector<16x1x32xf32> to vector<16x32xf32>
    %c0_2 = arith.constant 0 : index
    %c0_3 = arith.constant 0 : index
    %c0_4 = arith.constant 0 : index
    %2 = vector.load %arg2[%c0_2, %c0_3, %c0_4] : memref<16x8x32xf32, #tpu.memory_space<vmem>>, vector<16x8x32xf32>
    %3 = vector.shape_cast %2 : vector<16x8x32xf32> to vector<128x32xf32>
    %4 = tpu.concatenate %1, %3 in 0 : vector<16x32xf32>, vector<128x32xf32> -> vector<144x32xf32>
    %5 = arith.truncf %4 : vector<144x32xf32> to vector<144x32xbf16>
    %c0_5 = arith.constant 0 : index
    %c0_6 = arith.constant 0 : index
    %6 = vector.load %arg3[%c0_5, %c0_6] : memref<32x96xbf16, #tpu.memory_space<vmem>>, vector<32x96xbf16>
    %cst = arith.constant dense<0.000000e+00> : vector<144x96xf32>
    %7 = tpu.matmul %5, %6, %cst {dimension_numbers = #tpu.dot_dimension_numbers<[1], [0], [0], [1], [0, 0, 1, 1], [], []>} : vector<144x32xbf16>, vector<32x96xbf16>, vector<144x96xf32> -> vector<144x96xf32>
    %c0_7 = arith.constant 0 : index
    %c0_8 = arith.constant 0 : index
    %8 = vector.load %arg4[%c0_7, %c0_8] : memref<1x96xf32, #tpu.memory_space<vmem>>, vector<1x96xf32>
    %9 = vector.broadcast %8 : vector<1x96xf32> to vector<144x96xf32>
    %10 = arith.addf %7, %9 : vector<144x96xf32>
    %11 = vector.extract_strided_slice %10 {offsets = [0, 0], sizes = [16, 32], strides = [1, 1]} : vector<144x96xf32> to vector<16x32xf32>
    %12 = vector.shape_cast %11 : vector<16x32xf32> to vector<16x1x32xf32>
    %13 = vector.extract_strided_slice %10 {offsets = [16, 32], sizes = [128, 32], strides = [1, 1]} : vector<144x96xf32> to vector<128x32xf32>
    %14 = vector.shape_cast %13 : vector<128x32xf32> to vector<16x8x32xf32>
    %15 = vector.extract_strided_slice %10 {offsets = [16, 64], sizes = [128, 32], strides = [1, 1]} : vector<144x96xf32> to vector<128x32xf32>
    %16 = vector.shape_cast %15 : vector<128x32xf32> to vector<16x8x32xf32>
    %17 = vector.shape_cast %12 : vector<16x1x32xf32> to vector<16x1x1x32xf32>
    %18 = vector.shape_cast %14 : vector<16x8x32xf32> to vector<16x1x8x32xf32>
    %19 = vector.broadcast %17 : vector<16x1x1x32xf32> to vector<16x1x8x32xf32>
    %20 = arith.mulf %19, %18 : vector<16x1x8x32xf32>
    %21 = vector.shape_cast %20 : vector<16x1x8x32xf32> to vector<128x32xf32>
    %c0_9 = arith.constant 0 : index
    %c0_10 = arith.constant 0 : index
    %22 = vector.load %arg5[%c0_9, %c0_10] : memref<32x32xf32, #tpu.memory_space<vmem>>, vector<32x32xf32>
    %cst_11 = arith.constant dense<0.000000e+00> : vector<128x32xf32>
    %23 = tpu.matmul %21, %22, %cst_11 {dimension_numbers = #tpu.dot_dimension_numbers<[1], [0], [0], [1], [0, 0, 1, 1], [], []>, precision = #tpu.contract_precision<fp32>} : vector<128x32xf32>, vector<32x32xf32>, vector<128x32xf32> -> vector<128x32xf32>
    %24 = vector.shape_cast %23 : vector<128x32xf32> to vector<16x1x8x32xf32>
    %cst_12 = arith.constant 0.353553385 : f32
    %25 = vector.broadcast %cst_12 : f32 to vector<16x1x8x32xf32>
    %26 = arith.mulf %24, %25 : vector<16x1x8x32xf32>
    %cst_13 = arith.constant dense<0xFF800000> : vector<16x1x32xf32>
    %27 = vector.multi_reduction <maximumf>, %26, %cst_13 [2] : vector<16x1x8x32xf32> to vector<16x1x32xf32>
    %28 = vector.shape_cast %27 : vector<16x1x32xf32> to vector<16x1x1x32xf32>
    %29 = vector.broadcast %28 : vector<16x1x1x32xf32> to vector<16x1x8x32xf32>
    %30 = arith.subf %26, %29 : vector<16x1x8x32xf32>
    %31 = math.exp %30 : vector<16x1x8x32xf32>
    %cst_14 = arith.constant dense<0.000000e+00> : vector<16x1x32xf32>
    %32 = vector.multi_reduction <add>, %31, %cst_14 [2] : vector<16x1x8x32xf32> to vector<16x1x32xf32>
    %33 = vector.shape_cast %32 : vector<16x1x32xf32> to vector<16x1x1x32xf32>
    %34 = tpu.reciprocal %33 : vector<16x1x1x32xf32> -> vector<16x1x1x32xf32>
    %35 = vector.broadcast %34 : vector<16x1x1x32xf32> to vector<16x1x8x32xf32>
    %36 = arith.mulf %31, %35 : vector<16x1x8x32xf32>
    %cst_15 = arith.constant dense<0.000000e+00> : vector<16x1x8xf32>
    %37 = vector.multi_reduction <add>, %36, %cst_15 [3] : vector<16x1x8x32xf32> to vector<16x1x8xf32>
    %cst_16 = arith.constant 3.125000e-02 : f32
    %38 = vector.broadcast %cst_16 : f32 to vector<16x1x8xf32>
    %39 = arith.mulf %37, %38 : vector<16x1x8xf32>
    %40 = vector.shape_cast %16 : vector<16x8x32xf32> to vector<16x1x8x32xf32>
    %41 = arith.mulf %36, %40 : vector<16x1x8x32xf32>
    %cst_17 = arith.constant dense<0.000000e+00> : vector<16x1x32xf32>
    %42 = vector.multi_reduction <add>, %41, %cst_17 [2] : vector<16x1x8x32xf32> to vector<16x1x32xf32>
    %43 = vector.shape_cast %42 : vector<16x1x32xf32> to vector<16x32xf32>
    %44 = arith.truncf %43 : vector<16x32xf32> to vector<16x32xbf16>
    %c0_18 = arith.constant 0 : index
    %c0_19 = arith.constant 0 : index
    %45 = vector.load %arg6[%c0_18, %c0_19] : memref<32x32xbf16, #tpu.memory_space<vmem>>, vector<32x32xbf16>
    %cst_20 = arith.constant dense<0.000000e+00> : vector<16x32xf32>
    %46 = tpu.matmul %44, %45, %cst_20 {dimension_numbers = #tpu.dot_dimension_numbers<[1], [0], [0], [1], [0, 0, 1, 1], [], []>} : vector<16x32xbf16>, vector<32x32xbf16>, vector<16x32xf32> -> vector<16x32xf32>
    %c0_21 = arith.constant 0 : index
    %c0_22 = arith.constant 0 : index
    %47 = vector.load %arg7[%c0_21, %c0_22] : memref<1x32xf32, #tpu.memory_space<vmem>>, vector<1x32xf32>
    %48 = vector.broadcast %47 : vector<1x32xf32> to vector<16x32xf32>
    %49 = arith.addf %46, %48 : vector<16x32xf32>
    %cst_23 = arith.constant 0.000000e+00 : f32
    %50 = vector.broadcast %cst_23 : f32 to vector<16x1x128xf32>
    %c0_24 = arith.constant 0 : index
    %c0_25 = arith.constant 0 : index
    %c0_26 = arith.constant 0 : index
    %51 = vector.load %arg8[%c0_24, %c0_25, %c0_26] : memref<16x1x128xf32, #tpu.memory_space<vmem>>, vector<16x1x128xf32>
    tpu.vector_store %arg8[%c0_24, %c0_25, %c0_26], %50 {strides = array<i32>} : memref<16x1x128xf32, #tpu.memory_space<vmem>>, vector<16x1x128xf32>,
    %52 = vector.shape_cast %49 : vector<16x32xf32> to vector<16x1x32xf32>
    %c0_27 = arith.constant 0 : index
    %c0_28 = arith.constant 0 : index
    %c0_29 = arith.constant 0 : index
    %53 = vector.load %arg8[%c0_27, %c0_28, %c0_29] : memref<16x1x128xf32, #tpu.memory_space<vmem>>, vector<16x1x32xf32>
    tpu.vector_store %arg8[%c0_27, %c0_28, %c0_29], %52 {strides = array<i32>} : memref<16x1x128xf32, #tpu.memory_space<vmem>>, vector<16x1x32xf32>,
    %c0_30 = arith.constant 0 : index
    %c0_31 = arith.constant 0 : index
    %c32 = arith.constant 32 : index
    %54 = vector.load %arg8[%c0_30, %c0_31, %c32] : memref<16x1x128xf32, #tpu.memory_space<vmem>>, vector<16x1x8xf32>
    tpu.vector_store %arg8[%c0_30, %c0_31, %c32], %39 {strides = array<i32>} : memref<16x1x128xf32, #tpu.memory_space<vmem>>, vector<16x1x8xf32>,
    return
  }
  func.func @transform_0(%arg0: i32) -> (i32, i32, i32) {
    %c0_i32 = arith.constant 0 : i32
    %c0_i32_0 = arith.constant 0 : i32
    %c0_i32_1 = arith.constant 0 : i32
    return %arg0, %c0_i32, %c0_i32_0 : i32, i32, i32
  }
  func.func @transform_1(%arg0: i32) -> (i32, i32, i32) {
    %c0_i32 = arith.constant 0 : i32
    %c0_i32_0 = arith.constant 0 : i32
    %c0_i32_1 = arith.constant 0 : i32
    return %arg0, %c0_i32, %c0_i32_0 : i32, i32, i32
  }
  func.func @transform_2(%arg0: i32) -> (i32, i32) {
    %c0_i32 = arith.constant 0 : i32
    %c0_i32_0 = arith.constant 0 : i32
    %c0_i32_1 = arith.constant 0 : i32
    return %c0_i32, %c0_i32_0 : i32, i32
  }
  func.func @transform_3(%arg0: i32) -> (i32, i32) {
    %c0_i32 = arith.constant 0 : i32
    %c0_i32_0 = arith.constant 0 : i32
    %c0_i32_1 = arith.constant 0 : i32
    return %c0_i32, %c0_i32_0 : i32, i32
  }
  func.func @transform_4(%arg0: i32) -> (i32, i32) {
    %c0_i32 = arith.constant 0 : i32
    %c0_i32_0 = arith.constant 0 : i32
    %c0_i32_1 = arith.constant 0 : i32
    return %c0_i32, %c0_i32_0 : i32, i32
  }
  func.func @transform_5(%arg0: i32) -> (i32, i32) {
    %c0_i32 = arith.constant 0 : i32
    %c0_i32_0 = arith.constant 0 : i32
    %c0_i32_1 = arith.constant 0 : i32
    return %c0_i32, %c0_i32_0 : i32, i32
  }
  func.func @transform_6(%arg0: i32) -> (i32, i32) {
    %c0_i32 = arith.constant 0 : i32
    %c0_i32_0 = arith.constant 0 : i32
    %c0_i32_1 = arith.constant 0 : i32
    return %c0_i32, %c0_i32_0 : i32, i32
  }
  func.func @transform_7(%arg0: i32) -> (i32, i32, i32) {
    %c0_i32 = arith.constant 0 : i32
    %c0_i32_0 = arith.constant 0 : i32
    %c0_i32_1 = arith.constant 0 : i32
    return %arg0, %c0_i32, %c0_i32_0 : i32, i32, i32
  }
}

</mosaic_0001>

<bundles_post_ra>
// kernel: multimodal_attention_pool.1
= control target key start
LH: loop header
LB: loop body
LE: loop exit
PB: predicated region body
PF: predicated region fallthrough
CT: control target
= control target key end

     0   :  { %v4452_v0 = vlaneseq  ;;  %v4453_v1 = vmov 0.0   ;;  %vm3212_vm0 = vmmov 0   ;;  %v3213_v3 = vmov 1966171168   ;;  %s4444_s2 = inlined_call_operand.vmem [shape: bf16[32,96], index: 2, kind: input, shape index: {}]   ;;  %s4445_s0 = inlined_call_operand.vmem [shape: f32[16,1,32], index: 0, kind: input, shape index: {}]   ;;  %s4446_s1 = inlined_call_operand.vmem [shape: f32[16,8,32], index: 1, kind: input, shape index: {}]   ;;  %s4447_s4 = inlined_call_operand.vmem [shape: f32[32,32], index: 4, kind: input, shape index: {}]   ;;  %s4448_s3 = inlined_call_operand.vmem [shape: f32[1,96], index: 3, kind: input, shape index: {}]   ;;  %s4449_s5 = inlined_call_operand.vmem [shape: bf16[32,32], index: 5, kind: input, shape index: {}]   ;;  %s4450_s7 = inlined_call_operand.vmem [shape: f32[16,1,128], index: 7, kind: output, shape index: {}]   ;;  %s4451_s6 = inlined_call_operand.vmem [shape: f32[1,32], index: 6, kind: input, shape index: {}]  }
   0x1   :  { %2898 = vmatprep.subr.bf16.mxu0 %v4453_v1  ;;  %v3143_v2 = vld [vmem:[%s4444_s2 + $0x8] sm:$0xff]   ;;  %2902 = vmatprep.mubr.msk.bf16.mxu0 %vm3212_vm0, %v4453_v1  ;;  %v80_v4 = vunpack.c.l.s4 %v3213_v3  ;;  %v3144_v5 = vld [vmem:[%s4444_s2] sm:$0xff]   ;;  %vm207_vm1 = vcmask 261120   ;;  %v45_v55 = vld [vmem:[%s4446_s1 + $0x10] sm:$0xff]  ;;  %vm2401_vm2 = vcmask 1041409   ;;  %vm2403_vm3 = vcmask 1042434  }
   0x2   :  { %v3266_v6 = vshrl.u32 %v4452_v0, 7  ;;  %2899 = vmatpush3.bf16.msra.mxu0 %v3143_v2  ;;  %v27_v7 = vld [vmem:[%s4445_s0] sm:$0x1]  ;;  %v28_v8 = vld [vmem:[%s4445_s0 + $0x1] sm:$0x1]  ;;  %v44_v53 = vld [vmem:[%s4446_s1 + $0x8] sm:$0xff] }
   0x3   :  { %v29_v9 = vld [vmem:[%s4445_s0 + $0x2] sm:$0x1]  ;;  %v81_v10 = vunpack.c.0.s8 %v80_v4  ;;  %2900 = vmatprep.subr.bf16.mxu0 %v4453_v1  ;;  %v30_v11 = vld [vmem:[%s4445_s0 + $0x3] sm:$0x1]  ;;  %v31_v12 = vld [vmem:[%s4445_s0 + $0x4] sm:$0x1]  ;;  %v75_v14 = vcombine.low %v27_v7, %v28_v8 }
   0x4   :  { %v32_v13 = vld [vmem:[%s4445_s0 + $0x5] sm:$0x1]  ;;  %v33_v15 = vld [vmem:[%s4445_s0 + $0x6] sm:$0x1]  ;;  %v34_v16 = vld [vmem:[%s4445_s0 + $0x7] sm:$0x1]  ;;  %v76_v18 = vcombine.low %v29_v9, %v30_v11 }
   0x5   :  { %v35_v17 = vld [vmem:[%s4445_s0 + $0x8] sm:$0x1]  ;;  %v77_v19 = vcombine.low %v31_v12, %v32_v13  ;;  %v3297_v20 = vsub.s32 %v81_v10, %v3266_v6  ;;  %v36_v21 = vld [vmem:[%s4445_s0 + $0x9] sm:$0x1]  ;;  %v37_v22 = vld [vmem:[%s4445_s0 + $0xa] sm:$0x1]  ;;  %v78_v24 = vcombine.low %v33_v15, %v34_v16 }
   0x6   :  { %v38_v23 = vld [vmem:[%s4445_s0 + $0xb] sm:$0x1]  ;;  %2901 = vmatpush3.bf16.msra.mxu0 %v3144_v5  ;;  %v39_v25 = vld [vmem:[%s4445_s0 + $0xc] sm:$0x1]  ;;  %v40_v26 = vld [vmem:[%s4445_s0 + $0xd] sm:$0x1]  ;;  %v124_v31 = vcombine.low %v35_v17, %v36_v21 }
   0x7   :  { %4457 = vst [vmem:[#allocation2_spill] sm:$0xff] %v3297_v20  ;;  %v41_v27 = vld [vmem:[%s4445_s0 + $0xe] sm:$0x1]  ;;  %v85_v28 = vrot.slane %v75_v14, %v3297_v20  ;;  %v92_v29 = vrot.slane %v76_v18, %v3297_v20  ;;  %v99_v30 = vrot.slane %v77_v19, %v3297_v20  ;;  %v42_v32 = vld [vmem:[%s4445_s0 + $0xf] sm:$0x1]  ;;  %v106_v33 = vrot.slane %v78_v24, %v3297_v20  ;;  %v43_v52 = vld [vmem:[%s4446_s1] sm:$0xff] }
   0x8   :  { %v125_v34 = vcombine.low %v37_v22, %v38_v23  ;;  %v126_v35 = vcombine.low %v39_v25, %v40_v26  ;;  %v127_v37 = vcombine.low %v41_v27, %v42_v32  ;;  %v134_v38 = vrot.slane %v124_v31, %v3297_v20  ;;  %v46_v56 = vld [vmem:[%s4446_s1 + $0x18] sm:$0xff]  ;;  %v47_v58 = vld [vmem:[%s4446_s1 + $0x20] sm:$0xff]  ;;  %v48_v59 = vld [vmem:[%s4446_s1 + $0x28] sm:$0xff] }
   0x9   :  { %v107_v36 = vcombine.low %v85_v28, %v92_v29  ;;  %v108_v39 = vcombine.low %v99_v30, %v106_v33  ;;  %v176_v54 = vpack.c.bf16 %v44_v53, %v43_v52  ;;  %v177_v57 = vpack.c.bf16 %v46_v56, %v45_v55  ;;  %v49_v61 = vld [vmem:[%s4446_s1 + $0x30] sm:$0xff]  ;;  %v50_v62 = vld [vmem:[%s4446_s1 + $0x38] sm:$0xff]  ;;  %v51_v2 = vld [vmem:[%s4446_s1 + $0x40] sm:$0xff] }
   0xa   :  { %v141_v40 = vrot.slane %v125_v34, %v3297_v20  ;;  %v148_v41 = vrot.slane %v126_v35, %v3297_v20  ;;  %v155_v43 = vrot.slane %v127_v37, %v3297_v20  ;;  %v178_v60 = vpack.c.bf16 %v48_v59, %v47_v58  ;;  %v52_v3 = vld [vmem:[%s4446_s1 + $0x48] sm:$0xff]  ;;  %v53_v5 = vld [vmem:[%s4446_s1 + $0x50] sm:$0xff]  ;;  %v54_v7 = vld [vmem:[%s4446_s1 + $0x58] sm:$0xff] }
   0xb   :  { %v115_v42 = vrot.slane %v107_v36, %v3297_v20  ;;  %v122_v44 = vrot.slane %v108_v39, %v3297_v20  ;;  %v179_v63 = vpack.c.bf16 %v50_v62, %v49_v61  ;;  %v180_v4 = vpack.c.bf16 %v52_v3, %v51_v2  ;;  %v55_v9 = vld [vmem:[%s4446_s1 + $0x60] sm:$0xff]  ;;  %v56_v10 = vld [vmem:[%s4446_s1 + $0x68] sm:$0xff]  ;;  %v57_v12 = vld [vmem:[%s4446_s1 + $0x70] sm:$0xff] }
   0xc   :  { %v156_v45 = vcombine.low %v134_v38, %v141_v40  ;;  %v157_v46 = vcombine.low %v148_v41, %v155_v43  ;;  %v181_v8 = vpack.c.bf16 %v54_v7, %v53_v5  ;;  %v182_v11 = vpack.c.bf16 %v56_v10, %v55_v9  ;;  %v58_v13 = vld [vmem:[%s4446_s1 + $0x78] sm:$0xff]  ;;  %v3418_v19 = vld [vmem:[%s4447_s4 + $0x10] sm:$0xff]  ;;  %v3433_v23 = vld [vmem:[%s4447_s4 + $0x8] sm:$0xff] }
   0xd   :  { %v123_v48 = vcombine.low %v115_v42, %v122_v44  ;;  %v183_v14 = vpack.c.bf16 %v58_v13, %v57_v12  ;;  %v3410_v16 = vld [vmem:[%s4447_s4 + $0x18] sm:$0xff]  ;;  %v3422_v21 = vand.u32 4294901760, %v3418_v19  ;;  %v3437_v25 = vand.u32 4294901760, %v3433_v23  ;;  %v3443_v26 = vld [vmem:[%s4447_s4] sm:$0xff]  ;;  %s3215_s4 = smov 64  }
   0xe   :  { %v164_v47 = vrot.slane %v156_v45, %v3297_v20  ;;  %v171_v49 = vrot.slane %v157_v46, %v3297_v20  ;;  %v3413_v17 = vand.u32 4294901760, %v3410_v16  ;;  %v3449_v27 = vld [vmem:[%s4448_s3] ss:$0 sm:$0xff]  ;;  %v3453_v29 = vand.u32 4294901760, %v3443_v26  ;;  %s3214_s3 = smov 96  }
   0xf   :  { %vm2405_vm4 = vcmask 1043459   ;;  %vm2407_vm5 = vcmask 1044484   ;;  %vm2409_vm6 = vcmask 1045509   ;;  %vm2411_vm7 = vcmask 1046534  }
  0x10   :  { %v172_v50 = vcombine.low %v164_v47, %v171_v49  ;;  %3034 = vmatprep.subr.mxu0 %v3413_v17  ;;  %2938 = vmatprep.subr.mxu1 %v3413_v17  ;;  %v3494_v59 = vsub.f32 %v3410_v16, %v3413_v17  ;;  %vm2413_vm8 = vcmask 1047559   ;;  %vm2611_vm9 = vcmask 253952  }
  0x11   :  { %2939 = vmatpush3.msra.mxu1 %v3413_v17  ;;  %vm2727_vm10 = vcmask 319744  }
  0x12   :  { %v175_v51 = vpack.c.bf16 %v172_v50, %v123_v48  ;;  %2940 = vmatprep.subr.mxu1 %v3422_v21  ;;  %v3498_v62 = vand.u32 4294901760, %v3494_v59 }
  0x13   :  { %2941 = vmatpush3.msra.mxu1 %v3422_v21 }
  0x14   :  { %2903 = vmatmul.mubr.msk.bf16.vlgmr.msra.gmra.mxu0 %vm207_vm1, %v175_v51  ;;  %2942 = vmatprep.subr.mxu1 %v3437_v25  ;;  %v909_v2 = vsub.f32 %v3494_v59, %v3498_v62 }
  0x15   :  { %2906 = vmatprep.mubr.msk.bf16.mxu0 %vm3212_vm0, %v4453_v1  ;;  %3035 = vmatpush3.msra.mxu0 %v3413_v17 }
  0x16   :  { %3036 = vmatprep.subr.mxu0 %v3422_v21  ;;  %2943 = vmatpush3.msra.mxu1 %v3437_v25  ;;  %v3504_v5 = vand.u32 4294901760, %v909_v2 }
  0x17   :  { %3037 = vmatpush3.msra.mxu0 %v3422_v21  ;;  %2944 = vmatprep.subr.mxu1 %v3453_v29 }
  0x18   :  { %3038 = vmatprep.subr.mxu0 %v3437_v25  ;;  %2945 = vmatpush3.msra.mxu1 %v3453_v29 }
  0x19   :  { %3039 = vmatpush3.msra.mxu0 %v3437_v25  ;;  %2970 = vmatprep.subr.mxu1 %v3504_v5 }
  0x1a   :  { %3040 = vmatprep.subr.mxu0 %v3453_v29 }
  0x1b   :  { %3041 = vmatpush3.msra.mxu0 %v3453_v29 }
  0x1c   :  { %2907 = vmatmul.mubr.msk.bf16.gmra.mxu0 %vm207_vm1, %v176_v54  ;;  %3098 = vmatprep.subr.mxu0 %v3413_v17 }
  0x1d   :  { %2910 = vmatprep.mubr.msk.bf16.mxu0 %vm3212_vm0, %v4453_v1 }
  0x24   :  { %2911 = vmatmul.mubr.msk.bf16.gmra.mxu0 %vm207_vm1, %v177_v57 }
  0x25   :  { %2914 = vmatprep.mubr.msk.bf16.mxu0 %vm3212_vm0, %v4453_v1 }
  0x2c   :  { %2915 = vmatmul.mubr.msk.bf16.gmra.mxu0 %vm207_vm1, %v178_v60 }
  0x2d   :  { %2918 = vmatprep.mubr.msk.bf16.mxu0 %vm3212_vm0, %v4453_v1 }
  0x34   :  { %2919 = vmatmul.mubr.msk.bf16.gmra.mxu0 %vm207_vm1, %v179_v63 }
  0x35   :  { %2922 = vmatprep.mubr.msk.bf16.mxu0 %vm3212_vm0, %v4453_v1 }
  0x3c   :  { %2923 = vmatmul.mubr.msk.bf16.gmra.mxu0 %vm207_vm1, %v180_v4 }
  0x3d   :  { %2926 = vmatprep.mubr.msk.bf16.mxu0 %vm3212_vm0, %v4453_v1 }
  0x44   :  { %2927 = vmatmul.mubr.msk.bf16.gmra.mxu0 %vm207_vm1, %v181_v8 }
  0x45   :  { %2930 = vmatprep.mubr.msk.bf16.mxu0 %vm3212_vm0, %v4453_v1 }
  0x4c   :  { %2931 = vmatmul.mubr.msk.bf16.gmra.mxu0 %vm207_vm1, %v182_v11 }
  0x4d   :  { %2934 = vmatprep.mubr.msk.bf16.mxu0 %vm3212_vm0, %v4453_v1 }
  0x54   :  { %2935 = vmatmul.mubr.msk.bf16.gmra.mxu0 %vm207_vm1, %v183_v14 }
  0xd4   :  { %v3405_v15 = vpop.f32.mrf.mxu0 }
  0xd6   :  { %v2904_v18 = vpop.f32.mrf.mxu0 }
  0xd8   :  { %v3425_v22 = vpop.f32.mrf.mxu0 }
  0xda   :  { %v2905_v24 = vpop.f32.mrf.mxu0 }
  0xdc   :  { %v277_v28 = vpop.f32.mrf.mxu0 }
  0xdd   :  { %v3457_v30 = vadd.f32 %v3449_v27, %v277_v28 }
  0xde   :  { %v2908_v31 = vpop.f32.mrf.mxu0 }
  0xdf   :  { %536 = vrot.lane.b32.xlu0 %v3457_v30, %s3214_s3 }
  0xe0   :  { %v280_v32 = vpop.f32.mrf.mxu0 }
  0xe1   :  { %v3467_v33 = vadd.f32 %v3449_v27, %v280_v32 }
  0xe2   :  { %v2909_v34 = vpop.f32.mrf.mxu0 }
  0xe3   :  { %538 = vrot.lane.b32.xlu0 %v3467_v33, %s3214_s3 }
  0xe4   :  { %v285_v35 = vpop.f32.mrf.mxu0 }
  0xe5   :  { %v3474_v36 = vadd.f32 %v3449_v27, %v285_v35  ;;  %v3524_v35 = vsub.s32 0, %v3266_v6 }
  0xe6   :  { %v2912_v37 = vpop.f32.mrf.mxu0 }
  0xe7   :  { %540 = vrot.lane.b32.xlu1 %v3474_v36, %s3214_s3 }
  0xe8   :  { %v288_v38 = vpop.f32.mrf.mxu0 }
  0xe9   :  { %v289_v39 = vadd.f32 %v3449_v27, %v288_v38 }
  0xea   :  { %v2913_v40 = vpop.f32.mrf.mxu0 }
  0xeb   :  { %542 = vrot.lane.b32.xlu1 %v289_v39, %s3214_s3 }
  0xec   :  { %v293_v41 = vpop.f32.mrf.mxu0 }
  0xed   :  { %v294_v42 = vadd.f32 %v3449_v27, %v293_v41 }
  0xee   :  { %v2916_v43 = vpop.f32.mrf.mxu0 }
  0xef   :  { %544 = vrot.lane.b32.xlu0 %v294_v42, %s3214_s3 }
  0xf0   :  { %v296_v44 = vpop.f32.mrf.mxu0 }
  0xf1   :  { %v297_v45 = vadd.f32 %v3449_v27, %v296_v44 }
  0xf2   :  { %v2917_v46 = vpop.f32.mrf.mxu0 }
  0xf3   :  { %546 = vrot.lane.b32.xlu1 %v297_v45, %s3214_s3 }
  0xf4   :  { %v301_v47 = vpop.f32.mrf.mxu0 }
  0xf5   :  { %v302_v48 = vadd.f32 %v3449_v27, %v301_v47 }
  0xf6   :  { %v2920_v49 = vpop.f32.mrf.mxu0 }
  0xf7   :  { %548 = vrot.lane.b32.xlu0 %v302_v48, %s3214_s3 }
  0xf8   :  { %v304_v50 = vpop.f32.mrf.mxu0 }
  0xf9   :  { %v305_v51 = vadd.f32 %v3449_v27, %v304_v50 }
  0xfa   :  { %v2921_v52 = vpop.f32.mrf.mxu0 }
  0xfb   :  { %550 = vrot.lane.b32.xlu1 %v305_v51, %s3214_s3  ;;  %v3544_v52 = vsub.f32 %v3433_v23, %v3437_v25 }
  0xfc   :  { %v309_v53 = vpop.f32.mrf.mxu0 }
  0xfd   :  { %v310_v54 = vadd.f32 %v3449_v27, %v309_v53 }
  0xfe   :  { %v2924_v55 = vpop.f32.mrf.mxu0 }
  0xff   :  { %552 = vrot.lane.b32.xlu0 %v310_v54, %s3214_s3 }
 0x100   :  { %v312_v56 = vpop.f32.mrf.mxu0 }
 0x101   :  { %v313_v57 = vadd.f32 %v3449_v27, %v312_v56 }
 0x102   :  { %v2925_v58 = vpop.f32.mrf.mxu0 }
 0x103   :  { %554 = vrot.lane.b32.xlu1 %v313_v57, %s3214_s3 }
 0x104   :  { %v317_v60 = vpop.f32.mrf.mxu0 }
 0x105   :  { %v318_v61 = vadd.f32 %v3449_v27, %v317_v60 }
 0x106   :  { %v2928_v63 = vpop.f32.mrf.mxu0 }
 0x107   :  { %556 = vrot.lane.b32.xlu0 %v318_v61, %s3214_s3 }
 0x108   :  { %v320_v3 = vpop.f32.mrf.mxu0 }
 0x109   :  { %v321_v4 = vadd.f32 %v3449_v27, %v320_v3  ;;  %v3564_v3 = vand.u32 4294901760, %v3544_v52 }
 0x10a   :  { %v2929_v7 = vpop.f32.mrf.mxu0 }
 0x10b   :  { %558 = vrot.lane.b32.xlu1 %v321_v4, %s3214_s3 }
 0x10c   :  { %v325_v8 = vpop.f32.mrf.mxu0 }
 0x10d   :  { %v326_v9 = vadd.f32 %v3449_v27, %v325_v8 }
 0x10e   :  { %v2932_v10 = vpop.f32.mrf.mxu0 }
 0x10f   :  { %560 = vrot.lane.b32.xlu0 %v326_v9, %s3214_s3 }
 0x110   :  { %v328_v11 = vpop.f32.mrf.mxu0 }
 0x111   :  { %v329_v12 = vadd.f32 %v3449_v27, %v328_v11 }
 0x112   :  { %v2933_v13 = vpop.f32.mrf.mxu0 }
 0x113   :  { %562 = vrot.lane.b32.xlu1 %v329_v12, %s3214_s3 }
 0x114   :  { %v333_v14 = vpop.f32.mrf.mxu0 }
 0x115   :  { %v334_v16 = vadd.f32 %v3449_v27, %v333_v14 }
 0x116   :  { %v2936_v18 = vpop.f32.mrf.mxu0 }
 0x117   :  { %564 = vrot.lane.b32.xlu0 %v334_v16, %s3214_s3 }
 0x118   :  { %v336_v24 = vpop.f32.mrf.mxu0 }
 0x119   :  { %v337_v28 = vadd.f32 %v3449_v27, %v336_v24  ;;  %v923_v24 = vsub.f32 %v3544_v52, %v3564_v3 }
 0x11a   :  { %v2937_v31 = vpop.f32.mrf.mxu0 }
 0x11b   :  { %2166 = vrot.lane.b32.xlu0 %v3457_v30, %s3215_s4  ;;  %566 = vrot.lane.b32.xlu1 %v337_v28, %s3214_s3  ;;  %v270_v30 = vadd.f32 %v3449_v27, %v3405_v15 }
 0x11d   :  { %v349_v32 = vrot.slane %v270_v30, %v3297_v20  ;;  %v342_v40 = vcombine.high %v270_v30, %v270_v30 }
 0x11f   :  { %2182 = vrot.lane.b32.xlu0 %v310_v54, %s3215_s4  ;;  %2168 = vrot.lane.b32.xlu1 %v3467_v33, %s3215_s4  ;;  %v357_v33 = vcombine.high %v349_v32, %v349_v32  ;;  %v365_v34 = vrot.slane %v349_v32, %v3297_v20  ;;  %v356_v47 = vrot.slane %v342_v40, %v3297_v20 }
 0x121   :  { %v379_v37 = vrot.slane %v357_v33, %v3297_v20  ;;  %v387_v15 = vcombine.high %v365_v34, %v365_v34  ;;  %v372_v60 = vrot.slane %v356_v47, %v3297_v20  ;;  %v358_v2 = vcombine.high %v356_v47, %v356_v47 }
 0x123   :  { %2170 = vrot.lane.b32.xlu0 %v3474_v36, %s3215_s4  ;;  %2184 = vrot.lane.b32.xlu1 %v313_v57, %s3215_s4  ;;  %v443_v36 = vrot.slane %v365_v34, %v3524_v35  ;;  %v451_v50 = vrot.slane %v387_v15, %v3524_v35  ;;  %v3554_v57 = vsub.f32 %v3443_v26, %v3453_v29 }
 0x124   :  { %v386_v18 = vrot.slane %v358_v2, %v3297_v20 }
 0x125   :  { %v3572_v11 = vand.u32 4294901760, %v3554_v57 }
 0x126   :  { %v463_v40 = vrot.slane %v386_v18, %v3524_v35 }
 0x127   :  { %2172 = vrot.lane.b32.xlu0 %v289_v39, %s3215_s4  ;;  %2186 = vrot.lane.b32.xlu1 %v318_v61, %s3215_s4 }
 0x12b   :  { %2174 = vrot.lane.b32.xlu0 %v294_v42, %s3215_s4  ;;  %2188 = vrot.lane.b32.xlu1 %v321_v4, %s3215_s4  ;;  %v447_v42 = vrot.slane %v379_v37, %v3524_v35 }
 0x12f   :  { %2176 = vrot.lane.b32.xlu0 %v297_v45, %s3215_s4  ;;  %2190 = vrot.lane.b32.xlu1 %v326_v9, %s3215_s4  ;;  %v3534_v45 = vsub.f32 %v3418_v19, %v3422_v21 }
 0x131   :  { %v3550_v55 = vand.u32 4294901760, %v3534_v45 }
 0x133   :  { %2178 = vrot.lane.b32.xlu0 %v302_v48, %s3215_s4  ;;  %2192 = vrot.lane.b32.xlu1 %v329_v12, %s3215_s4  ;;  %v916_v9 = vsub.f32 %v3534_v45, %v3550_v55 }
 0x135   :  { %v917_v33 = vand.u32 4294901760, %v916_v9 }
 0x137   :  { %2180 = vrot.lane.b32.xlu0 %v305_v51, %s3215_s4  ;;  %2194 = vrot.lane.b32.xlu1 %v334_v16, %s3215_s4  ;;  %v389_v51 = vcombine.high %v379_v37, %v379_v37  ;;  %v459_v16 = vrot.slane %v372_v60, %v3524_v35  ;;  %v3593_v37 = vadd.f32 %v3449_v27, %v3425_v22 }
 0x139   :  { %v455_v63 = vrot.slane %v389_v51, %v3524_v35 }
 0x13b   :  { %2196 = vrot.lane.b32.xlu1 %v337_v28, %s3215_s4 }
 0x151   :  { %v537_v38 = vpop.permute.xlu0 %536 }
 0x152   :  { %v584_v39 = vmul.f32 %v537_v38, %v443_v36  ;;  %v930_v36 = vsub.f32 %v3554_v57, %v3572_v11 }
 0x154   :  { %v605_v41 = vsel %vm207_vm1, %v584_v39, 0 }
 0x155   :  { %v3530_v43 = vand.u32 4294901760, %v605_v41  ;;  %v539_v44 = vpop.permute.xlu0 %538 }
 0x156   :  { %v585_v46 = vmul.f32 %v539_v44, %v447_v42  ;;  %v924_v42 = vand.u32 4294901760, %v923_v24 }
 0x157   :  { %v3538_v48 = vsub.f32 %v605_v41, %v3530_v43  ;;  %v388_v41 = vcombine.high %v372_v60, %v372_v60 }
 0x158   :  { %v608_v49 = vsel %vm207_vm1, %v585_v46, 0  ;;  %v931_v46 = vand.u32 4294901760, %v930_v36 }
 0x159   :  { %v3546_v53 = vand.u32 4294901760, %v608_v49  ;;  %v541_v54 = vpop.permute.xlu1 %540  ;;  %v723_v19 = vand.u32 4294901760, %v3538_v48  ;;  %v467_v51 = vrot.slane %v388_v41, %v3524_v35  ;;  %v391_v41 = vcombine.high %v3593_v37, %v3593_v37 }
 0x15a   :  { %v586_v56 = vmul.f32 %v541_v54, %v451_v50 }
 0x15b   :  { %v3557_v58 = vsub.f32 %v608_v49, %v3546_v53  ;;  %3042 = vmatprep.mubr.f32.mxu0 %v723_v19  ;;  %v724_v23 = vsub.f32 %v3538_v48, %v723_v19  ;;  %v398_v49 = vrot.slane %v3593_v37, %v3297_v20  ;;  %v405_v37 = vrot.slane %v391_v41, %v3297_v20 }
 0x15c   :  { %v611_v61 = vsel %vm207_vm1, %v586_v56, 0 }
 0x15d   :  { %v733_v4 = vand.u32 4294901760, %v3557_v58  ;;  %v3567_v26 = vand.u32 4294901760, %v611_v61  ;;  %v543_v7 = vpop.permute.xlu1 %542  ;;  %v725_v8 = vand.u32 4294901760, %v724_v23  ;;  %v406_v2 = vcombine.high %v398_v49, %v398_v49 }
 0x15e   :  { %v587_v10 = vmul.f32 %v543_v7, %v455_v63  ;;  %v414_v7 = vrot.slane %v398_v49, %v3297_v20 }
 0x15f   :  { %v3575_v12 = vsub.f32 %v611_v61, %v3567_v26  ;;  %2946 = vmatprep.mubr.f32.mxu1 %v725_v8  ;;  %3043 = vmatmul.mubr.f32.vlgmr.msra.gmra.mxu0 %v733_v4  ;;  %v734_v13 = vsub.f32 %v3557_v58, %v733_v4 }
 0x160   :  { %v614_v14 = vsel %vm207_vm1, %v587_v10, 0  ;;  %3099 = vmatpush3.msra.mxu0 %v3413_v17 }
 0x161   :  { %v3584_v28 = vand.u32 4294901760, %v614_v14  ;;  %v545_v31 = vpop.permute.xlu0 %544  ;;  %v735_v30 = vand.u32 4294901760, %v734_v13  ;;  %v743_v32 = vand.u32 4294901760, %v3575_v12  ;;  %3100 = vmatprep.subr.mxu0 %v3422_v21 }
 0x162   :  { %v588_v34 = vmul.f32 %v545_v31, %v459_v16  ;;  %3101 = vmatpush3.msra.mxu0 %v3422_v21  ;;  %v475_v31 = vrot.slane %v414_v7, %v3524_v35 }
 0x163   :  { %v3596_v17 = vsub.f32 %v614_v14, %v3584_v28  ;;  %2947 = vmatmul.mubr.f32.vlgmr.msra.gmra.mxu1 %v735_v30  ;;  %3045 = vmatprep.mubr.f32.mxu0 %v743_v32  ;;  %v744_v38 = vsub.f32 %v3575_v12, %v743_v32  ;;  %v428_v30 = vrot.slane %v406_v2, %v3297_v20 }
 0x164   :  { %v617_v39 = vsel %vm207_vm1, %v588_v34, 0  ;;  %2971 = vmatpush3.msra.mxu1 %v3504_v5  ;;  %3102 = vmatprep.subr.mxu0 %v3437_v25 }
 0x165   :  { %v3603_v21 = vand.u32 4294901760, %v617_v39  ;;  %v547_v22 = vpop.permute.xlu1 %546  ;;  %v745_v27 = vand.u32 4294901760, %v744_v38  ;;  %v753_v15 = vand.u32 4294901760, %v3596_v17  ;;  %2972 = vmatprep.subr.mxu1 %v917_v33  ;;  %3103 = vmatpush3.msra.mxu0 %v3437_v25  ;;  %v390_v25 = vcombine.high %v386_v18, %v386_v18 }
 0x166   :  { %v589_v44 = vmul.f32 %v547_v22, %v463_v40  ;;  %2973 = vmatpush3.msra.mxu1 %v917_v33  ;;  %3104 = vmatprep.subr.mxu0 %v3453_v29  ;;  %v479_v22 = vrot.slane %v428_v30, %v3524_v35 }
 0x167   :  { %v3609_v47 = vsub.f32 %v617_v39, %v3603_v21  ;;  %2949 = vmatprep.mubr.f32.mxu1 %v745_v27  ;;  %3046 = vmatmul.mubr.f32.gmra.mxu0 %v753_v15  ;;  %v754_v5 = vsub.f32 %v3596_v17, %v753_v15  ;;  %v436_v27 = vcombine.high %v414_v7, %v414_v7 }
 0x168   :  { %v620_v50 = vsel %vm207_vm1, %v589_v44, 0  ;;  %2974 = vmatprep.subr.mxu1 %v924_v42  ;;  %3105 = vmatpush3.msra.mxu0 %v3453_v29  ;;  %v471_v29 = vrot.slane %v390_v25, %v3524_v35 }
 0x169   :  { %v3617_v54 = vand.u32 4294901760, %v620_v50  ;;  %v549_v19 = vpop.permute.xlu0 %548  ;;  %v755_v56 = vand.u32 4294901760, %v754_v5  ;;  %v763_v23 = vand.u32 4294901760, %v3609_v47  ;;  %2975 = vmatpush3.msra.mxu1 %v924_v42 }
 0x16a   :  { %v590_v60 = vmul.f32 %v549_v19, %v467_v51  ;;  %2976 = vmatprep.subr.mxu1 %v931_v46  ;;  %v483_v19 = vrot.slane %v436_v27, %v3524_v35 }
 0x16b   :  { %v3621_v61 = vsub.f32 %v620_v50, %v3617_v54  ;;  %2950 = vmatmul.mubr.f32.gmra.mxu1 %v755_v56  ;;  %3048 = vmatprep.mubr.f32.mxu0 %v763_v23  ;;  %v764_v63 = vsub.f32 %v3609_v47, %v763_v23  ;;  %v438_v56 = vcombine.high %v428_v30, %v428_v30 }
 0x16c   :  { %v623_v4 = vsel %vm207_vm1, %v590_v60, 0  ;;  %2977 = vmatpush3.msra.mxu1 %v931_v46 }
 0x16d   :  { %v3627_v8 = vand.u32 4294901760, %v623_v4  ;;  %v551_v9 = vpop.permute.xlu1 %550  ;;  %v765_v10 = vand.u32 4294901760, %v764_v63  ;;  %v773_v13 = vand.u32 4294901760, %v3621_v61  ;;  %3002 = vmatprep.subr.mxu1 %v3494_v59 }
 0x16e   :  { %v591_v14 = vmul.f32 %v551_v9, %v471_v29 }
 0x16f   :  { %v3632_v16 = vsub.f32 %v623_v4, %v3627_v8  ;;  %2952 = vmatprep.mubr.f32.mxu1 %v765_v10  ;;  %3049 = vmatmul.mubr.f32.gmra.mxu0 %v773_v13  ;;  %v774_v18 = vsub.f32 %v3621_v61, %v773_v13  ;;  %v487_v10 = vrot.slane %v438_v56, %v3524_v35 }
 0x170   :  { %v626_v24 = vsel %vm207_vm1, %v591_v14, 0  ;;  %v421_v13 = vrot.slane %v405_v37, %v3297_v20  ;;  %v407_v14 = vcombine.high %v405_v37, %v405_v37 }
 0x171   :  { %v3638_v32 = vand.u32 4294901760, %v626_v24  ;;  %v553_v33 = vpop.permute.xlu0 %552  ;;  %v775_v34 = vand.u32 4294901760, %v774_v18  ;;  %v783_v36 = vand.u32 4294901760, %v3632_v16 }
 0x172   :  { %v592_v38 = vmul.f32 %v553_v33, %v475_v31  ;;  %v435_v41 = vrot.slane %v407_v14, %v3297_v20 }
 0x173   :  { %v3642_v39 = vsub.f32 %v626_v24, %v3638_v32  ;;  %2953 = vmatmul.mubr.f32.gmra.mxu1 %v775_v34  ;;  %3051 = vmatprep.mubr.f32.mxu0 %v783_v36  ;;  %v784_v40 = vsub.f32 %v3632_v16, %v783_v36 }
 0x174   :  { %v629_v42 = vsel %vm207_vm1, %v592_v38, 0  ;;  %v495_v37 = vrot.slane %v435_v41, %v3524_v35  ;;  %v439_v14 = vcombine.high %v435_v41, %v435_v41 }
 0x175   :  { %v3649_v15 = vand.u32 4294901760, %v629_v42  ;;  %v555_v44 = vpop.permute.xlu1 %554  ;;  %v785_v46 = vand.u32 4294901760, %v784_v40  ;;  %v793_v5 = vand.u32 4294901760, %v3642_v39  ;;  %v491_v40 = vrot.slane %v421_v13, %v3524_v35 }
 0x176   :  { %v593_v49 = vmul.f32 %v555_v44, %v479_v22 }
 0x177   :  { %v3653_v50 = vsub.f32 %v629_v42, %v3649_v15  ;;  %2955 = vmatprep.mubr.f32.mxu1 %v785_v46  ;;  %3052 = vmatmul.mubr.f32.gmra.mxu0 %v793_v5  ;;  %v794_v51 = vsub.f32 %v3642_v39, %v793_v5 }
 0x178   :  { %v632_v25 = vsel %vm207_vm1, %v593_v49, 0 }
 0x179   :  { %v3659_v23 = vand.u32 4294901760, %v632_v25  ;;  %v557_v60 = vpop.permute.xlu0 %556  ;;  %v795_v63 = vand.u32 4294901760, %v794_v51  ;;  %v803_v2 = vand.u32 4294901760, %v3653_v50 }
 0x17a   :  { %v594_v4 = vmul.f32 %v557_v60, %v483_v19 }
 0x17b   :  { %v3663_v29 = vsub.f32 %v632_v25, %v3659_v23  ;;  %2956 = vmatmul.mubr.f32.gmra.mxu1 %v795_v63  ;;  %3054 = vmatprep.mubr.f32.mxu0 %v803_v2  ;;  %v804_v7 = vsub.f32 %v3653_v50, %v803_v2  ;;  %v437_v25 = vcombine.high %v421_v13, %v421_v13 }
 0x17c   :  { %v635_v9 = vsel %vm207_vm1, %v594_v4, 0 }
 0x17d   :  { %v3669_v18 = vand.u32 4294901760, %v635_v9  ;;  %v559_v24 = vpop.permute.xlu1 %558  ;;  %v805_v31 = vand.u32 4294901760, %v804_v7  ;;  %v813_v30 = vand.u32 4294901760, %v3663_v29 }
 0x17e   :  { %v595_v33 = vmul.f32 %v559_v24, %v487_v10  ;;  %v499_v10 = vrot.slane %v437_v25, %v3524_v35 }
 0x17f   :  { %v3673_v34 = vsub.f32 %v635_v9, %v3669_v18  ;;  %2958 = vmatprep.mubr.f32.mxu1 %v805_v31  ;;  %3055 = vmatmul.mubr.f32.gmra.mxu0 %v813_v30  ;;  %v814_v36 = vsub.f32 %v3663_v29, %v813_v30 }
 0x180   :  { %v638_v38 = vsel %vm207_vm1, %v595_v33, 0 }
 0x181   :  { %v3679_v42 = vand.u32 4294901760, %v638_v38  ;;  %v561_v22 = vpop.permute.xlu0 %560  ;;  %v815_v27 = vand.u32 4294901760, %v814_v36  ;;  %v823_v44 = vand.u32 4294901760, %v3673_v34 }
 0x182   :  { %v596_v46 = vmul.f32 %v561_v22, %v491_v40  ;;  %v503_v22 = vrot.slane %v439_v14, %v3524_v35 }
 0x183   :  { %v3683_v5 = vsub.f32 %v638_v38, %v3679_v42  ;;  %2959 = vmatmul.mubr.f32.gmra.mxu1 %v815_v27  ;;  %3057 = vmatprep.mubr.f32.mxu0 %v823_v44  ;;  %v824_v49 = vsub.f32 %v3673_v34, %v823_v44 }
 0x184   :  { %v641_v51 = vsel %vm207_vm1, %v596_v46, 0 }
 0x185   :  { %v3688_v19 = vand.u32 4294901760, %v641_v51  ;;  %v563_v56 = vpop.permute.xlu1 %562  ;;  %v825_v60 = vand.u32 4294901760, %v824_v49  ;;  %v833_v63 = vand.u32 4294901760, %v3683_v5 }
 0x186   :  { %v597_v2 = vmul.f32 %v563_v56, %v495_v37 }
 0x187   :  { %v3692_v4 = vsub.f32 %v641_v51, %v3688_v19  ;;  %2961 = vmatprep.mubr.f32.mxu1 %v825_v60  ;;  %3058 = vmatmul.mubr.f32.gmra.mxu0 %v833_v63  ;;  %v834_v7 = vsub.f32 %v3683_v5, %v833_v63 }
 0x188   :  { %v644_v9 = vsel %vm207_vm1, %v597_v2, 0 }
 0x189   :  { %v3697_v13 = vand.u32 4294901760, %v644_v9  ;;  %v565_v24 = vpop.permute.xlu0 %564  ;;  %v835_v31 = vand.u32 4294901760, %v834_v7  ;;  %v843_v30 = vand.u32 4294901760, %v3692_v4 }
 0x18a   :  { %v598_v33 = vmul.f32 %v565_v24, %v499_v10 }
 0x18b   :  { %v3701_v36 = vsub.f32 %v644_v9, %v3697_v13  ;;  %2962 = vmatmul.mubr.f32.gmra.mxu1 %v835_v31  ;;  %3060 = vmatprep.mubr.f32.mxu0 %v843_v30  ;;  %v844_v38 = vsub.f32 %v3692_v4, %v843_v30 }
 0x18c   :  { %v647_v40 = vsel %vm207_vm1, %v598_v33, 0 }
 0x18d   :  { %v3706_v27 = vand.u32 4294901760, %v647_v40  ;;  %v567_v41 = vpop.permute.xlu1 %566  ;;  %v845_v44 = vand.u32 4294901760, %v844_v38  ;;  %v853_v46 = vand.u32 4294901760, %v3701_v36 }
 0x18e   :  { %v599_v49 = vmul.f32 %v567_v41, %v503_v22 }
 0x18f   :  { %v3710_v51 = vsub.f32 %v647_v40, %v3706_v27  ;;  %2964 = vmatprep.mubr.f32.mxu1 %v845_v44  ;;  %3061 = vmatmul.mubr.f32.gmra.mxu0 %v853_v46  ;;  %v854_v37 = vsub.f32 %v3701_v36, %v853_v46 }
 0x190   :  { %v650_v25 = vsel %vm207_vm1, %v599_v49, 0 }
 0x191   :  { %v3714_v56 = vand.u32 4294901760, %v650_v25  ;;  %v855_v60 = vand.u32 4294901760, %v854_v37  ;;  %v863_v35 = vand.u32 4294901760, %v3710_v51 }
 0x193   :  { %v3718_v63 = vsub.f32 %v650_v25, %v3714_v56  ;;  %2965 = vmatmul.mubr.f32.gmra.mxu1 %v855_v60  ;;  %3063 = vmatprep.mubr.f32.mxu0 %v863_v35  ;;  %v864_v2 = vsub.f32 %v3710_v51, %v863_v35 }
 0x195   :  { %v865_v7 = vand.u32 4294901760, %v864_v2  ;;  %v873_v9 = vand.u32 4294901760, %v3718_v63 }
 0x197   :  { %2967 = vmatprep.mubr.f32.mxu1 %v865_v7  ;;  %3064 = vmatmul.mubr.f32.gmra.mxu0 %v873_v9  ;;  %v874_v10 = vsub.f32 %v3718_v63, %v873_v9 }
 0x198   :  { %3106 = vmatprep.mubr.f32.mxu0 %v3530_v43 }
 0x199   :  { %v875_v14 = vand.u32 4294901760, %v874_v10 }
 0x19b   :  { %2968 = vmatmul.mubr.f32.gmra.mxu1 %v875_v14  ;;  %3107 = vmatmul.mubr.f32.vlgmr.msra.gmra.mxu0 %v3546_v53 }
 0x19c   :  { %2978 = vmatprep.mubr.f32.mxu1 %v3530_v43  ;;  %3109 = vmatprep.mubr.f32.mxu0 %v3567_v26 }
 0x19f   :  { %2979 = vmatmul.mubr.f32.vlgmr.msra.gmra.mxu1 %v3546_v53  ;;  %3110 = vmatmul.mubr.f32.gmra.mxu0 %v3584_v28 }
 0x1a0   :  { %3003 = vmatpush3.msra.mxu1 %v3494_v59  ;;  %2981 = vmatprep.mubr.f32.mxu1 %v3567_v26 }
 0x1a1   :  { %3112 = vmatprep.mubr.f32.mxu0 %v3603_v21  ;;  %3004 = vmatprep.subr.mxu1 %v3534_v45 }
 0x1a2   :  { %3005 = vmatpush3.msra.mxu1 %v3534_v45 }
 0x1a3   :  { %2982 = vmatmul.mubr.f32.gmra.mxu1 %v3584_v28  ;;  %3113 = vmatmul.mubr.f32.gmra.mxu0 %v3617_v54 }
 0x1a4   :  { %2984 = vmatprep.mubr.f32.mxu1 %v3603_v21  ;;  %3115 = vmatprep.mubr.f32.mxu0 %v3627_v8 }
 0x1a5   :  { %3006 = vmatprep.subr.mxu1 %v3544_v52 }
 0x1a6   :  { %3007 = vmatpush3.msra.mxu1 %v3544_v52 }
 0x1a7   :  { %2985 = vmatmul.mubr.f32.gmra.mxu1 %v3617_v54  ;;  %3116 = vmatmul.mubr.f32.gmra.mxu0 %v3638_v32 }
 0x1a8   :  { %2987 = vmatprep.mubr.f32.mxu1 %v3627_v8  ;;  %3118 = vmatprep.mubr.f32.mxu0 %v3649_v15 }
 0x1a9   :  { %3008 = vmatprep.subr.mxu1 %v3554_v57 }
 0x1aa   :  { %3009 = vmatpush3.msra.mxu1 %v3554_v57 }
 0x1ab   :  { %2988 = vmatmul.mubr.f32.gmra.mxu1 %v3638_v32  ;;  %3119 = vmatmul.mubr.f32.gmra.mxu0 %v3659_v23 }
 0x1ac   :  { %2990 = vmatprep.mubr.f32.mxu1 %v3649_v15  ;;  %3121 = vmatprep.mubr.f32.mxu0 %v3669_v18 }
 0x1ad   :  { %3066 = vmatprep.subr.mxu1 %v3498_v62 }
 0x1af   :  { %2991 = vmatmul.mubr.f32.gmra.mxu1 %v3659_v23  ;;  %3122 = vmatmul.mubr.f32.gmra.mxu0 %v3679_v42 }
 0x1b0   :  { %2993 = vmatprep.mubr.f32.mxu1 %v3669_v18  ;;  %3124 = vmatprep.mubr.f32.mxu0 %v3688_v19 }
 0x1b3   :  { %2994 = vmatmul.mubr.f32.gmra.mxu1 %v3679_v42  ;;  %3125 = vmatmul.mubr.f32.gmra.mxu0 %v3697_v13 }
 0x1b4   :  { %2996 = vmatprep.mubr.f32.mxu1 %v3688_v19  ;;  %3127 = vmatprep.mubr.f32.mxu0 %v3706_v27 }
 0x1b7   :  { %2997 = vmatmul.mubr.f32.gmra.mxu1 %v3697_v13  ;;  %3128 = vmatmul.mubr.f32.gmra.mxu0 %v3714_v56 }
 0x1b8   :  { %2999 = vmatprep.mubr.f32.mxu1 %v3706_v27 }
 0x1bb   :  { %3000 = vmatmul.mubr.f32.gmra.mxu1 %v3714_v56 }
 0x1bc   :  { %3010 = vmatprep.mubr.f32.mxu1 %v3538_v48 }
 0x1bf   :  { %3011 = vmatmul.mubr.f32.vlgmr.msra.gmra.mxu1 %v3557_v58 }
 0x1c0   :  { %3067 = vmatpush3.msra.mxu1 %v3498_v62  ;;  %3013 = vmatprep.mubr.f32.mxu1 %v3575_v12 }
 0x1c1   :  { %3068 = vmatprep.subr.mxu1 %v3550_v55 }
 0x1c2   :  { %3069 = vmatpush3.msra.mxu1 %v3550_v55 }
 0x1c3   :  { %3014 = vmatmul.mubr.f32.gmra.mxu1 %v3596_v17  ;;  %3070 = vmatprep.subr.mxu1 %v3564_v3 }
 0x1c4   :  { %3016 = vmatprep.mubr.f32.mxu1 %v3609_v47  ;;  %3071 = vmatpush3.msra.mxu1 %v3564_v3 }
 0x1c5   :  { %3072 = vmatprep.subr.mxu1 %v3572_v11 }
 0x1c6   :  { %3073 = vmatpush3.msra.mxu1 %v3572_v11 }
 0x1c7   :  { %3017 = vmatmul.mubr.f32.gmra.mxu1 %v3621_v61  ;;  %3130 = vmatprep.subr.bf16.mxu1 %v4453_v1 }
 0x1c8   :  { %3019 = vmatprep.mubr.f32.mxu1 %v3632_v16 }
 0x1cb   :  { %3020 = vmatmul.mubr.f32.gmra.mxu1 %v3642_v39 }
 0x1cc   :  { %3022 = vmatprep.mubr.f32.mxu1 %v3653_v50 }
 0x1cf   :  { %3023 = vmatmul.mubr.f32.gmra.mxu1 %v3663_v29 }
 0x1d0   :  { %3025 = vmatprep.mubr.f32.mxu1 %v3673_v34 }
 0x1d3   :  { %3026 = vmatmul.mubr.f32.gmra.mxu1 %v3683_v5 }
 0x1d4   :  { %3028 = vmatprep.mubr.f32.mxu1 %v3692_v4 }
 0x1d7   :  { %3029 = vmatmul.mubr.f32.gmra.mxu1 %v3701_v36 }
 0x1d8   :  { %3031 = vmatprep.mubr.f32.mxu1 %v3710_v51 }
 0x1db   :  { %3032 = vmatmul.mubr.f32.gmra.mxu1 %v3718_v63 }
 0x1dc   :  { %3074 = vmatprep.mubr.f32.mxu1 %v3530_v43 }
 0x1df   :  { %3075 = vmatmul.mubr.f32.vlgmr.msra.gmra.mxu1 %v3546_v53 }
 0x1e0   :  { %3077 = vmatprep.mubr.f32.mxu1 %v3567_v26 }
 0x1e3   :  { %3078 = vmatmul.mubr.f32.gmra.mxu1 %v3584_v28 }
 0x1e4   :  { %3080 = vmatprep.mubr.f32.mxu1 %v3603_v21 }
 0x1e7   :  { %3081 = vmatmul.mubr.f32.gmra.mxu1 %v3617_v54 }
 0x1e8   :  { %3083 = vmatprep.mubr.f32.mxu1 %v3627_v8 }
 0x1eb   :  { %3084 = vmatmul.mubr.f32.gmra.mxu1 %v3638_v32 }
 0x1ec   :  { %3086 = vmatprep.mubr.f32.mxu1 %v3649_v15 }
 0x1ef   :  { %3087 = vmatmul.mubr.f32.gmra.mxu1 %v3659_v23 }
 0x1f0   :  { %3089 = vmatprep.mubr.f32.mxu1 %v3669_v18 }
 0x1f3   :  { %3090 = vmatmul.mubr.f32.gmra.mxu1 %v3679_v42 }
 0x1f4   :  { %3092 = vmatprep.mubr.f32.mxu1 %v3688_v19 }
 0x1f7   :  { %3093 = vmatmul.mubr.f32.gmra.mxu1 %v3697_v13 }
 0x1f8   :  { %3095 = vmatprep.mubr.f32.mxu1 %v3706_v27 }
 0x1fb   :  { %3096 = vmatmul.mubr.f32.gmra.mxu1 %v3714_v56 }
 0x1fc   :  { %3134 = vmatprep.mubr.msk.bf16.mxu1 %vm3212_vm0, %v4453_v1  ;;  %v3145_v1 = vld [vmem:[%s4449_s5 + $0x8] sm:$0xff]  }
 0x1fd   :  { %3131 = vmatpush3.bf16.msra.mxu1 %v3145_v1 }
 0x21f   :  { %v3813_v47 = vpop.f32.mrf.mxu0 }
 0x221   :  { %v3817_v16 = vpop.f32.mrf.mxu0 }
 0x223   :  { %v3805_v59 = vpop.f32.mrf.mxu1 }
 0x225   :  { %v3807_v62 = vpop.f32.mrf.mxu1 }
 0x227   :  { %v3821_v15 = vpop.f32.mrf.mxu0 }
 0x229   :  { %v3825_v18 = vpop.f32.mrf.mxu0 }
 0x22b   :  { %v2951_v43 = vpop.f32.mrf.mxu1 }
 0x22d   :  { %v747_v45 = vpop.f32.mrf.mxu1 }
 0x22f   :  { %v3829_v5 = vpop.f32.mrf.mxu0 }
 0x231   :  { %v3833_v24 = vpop.f32.mrf.mxu0 }
 0x233   :  { %v2954_v48 = vpop.f32.mrf.mxu1 }
 0x235   :  { %v3809_v52 = vpop.f32.mrf.mxu1 }
 0x237   :  { %v3837_v33 = vpop.f32.mrf.mxu0 }
 0x239   :  { %v3841_v27 = vpop.f32.mrf.mxu0 }
 0x23b   :  { %v2957_v53 = vpop.f32.mrf.mxu1 }
 0x23d   :  { %v3811_v55 = vpop.f32.mrf.mxu1 }
 0x23f   :  { %v3843_v46 = vpop.f32.mrf.mxu0 }
 0x241   :  { %v3847_v56 = vpop.f32.mrf.mxu0 }
 0x243   :  { %v2960_v57 = vpop.f32.mrf.mxu1 }
 0x245   :  { %v807_v58 = vpop.f32.mrf.mxu1 }
 0x247   :  { %v3851_v63 = vpop.f32.mrf.mxu0 }
 0x249   :  { %v3853_v9 = vpop.f32.mrf.mxu0 }
 0x24b   :  { %v2963_v3 = vpop.f32.mrf.mxu1 }
 0x24d   :  { %v827_v26 = vpop.f32.mrf.mxu1 }
 0x24f   :  { %v3855_v14 = vpop.f32.mrf.mxu0 }
 0x253   :  { %v2966_v11 = vpop.f32.mrf.mxu1 }
 0x255   :  { %v847_v12 = vpop.f32.mrf.mxu1 }
 0x25b   :  { %v2969_v28 = vpop.f32.mrf.mxu1 }
 0x25d   :  { %v867_v17 = vpop.f32.mrf.mxu1 }
 0x25f   :  { %v2980_v21 = vpop.f32.mrf.mxu1 }
 0x261   :  { %v968_v54 = vpop.f32.mrf.mxu1 }
 0x263   :  { %v2983_v61 = vpop.f32.mrf.mxu1 }
 0x264   :  { %v3815_v8 = vadd.f32 %v2983_v61, %v2951_v43 }
 0x265   :  { %v980_v32 = vpop.f32.mrf.mxu1 }
 0x266   :  { %v3819_v39 = vadd.f32 %v980_v32, %v747_v45 }
 0x267   :  { %v2986_v50 = vpop.f32.mrf.mxu1 }
 0x268   :  { %v3823_v23 = vadd.f32 %v2986_v50, %v2954_v48  ;;  %v3857_v48 = vpop.f32.mrf.mxu0 }
 0x269   :  { %v992_v29 = vpop.f32.mrf.mxu1 }
 0x26b   :  { %v2989_v34 = vpop.f32.mrf.mxu1 }
 0x26c   :  { %v3827_v42 = vadd.f32 %v2989_v34, %v2957_v53 }
 0x26d   :  { %v1004_v19 = vpop.f32.mrf.mxu1 }
 0x26e   :  { %v1005_v20 = vadd.f32 %v1004_v19, %v3811_v55 }
 0x26f   :  { %v2992_v4 = vpop.f32.mrf.mxu1 }
 0x270   :  { %v3831_v13 = vadd.f32 %v2992_v4, %v2960_v57  ;;  %v3859_v57 = vpop.f32.mrf.mxu0  ;;  %v975_v4 = vadd.f32 %v2980_v21, %v3805_v59 }
 0x271   :  { %v1016_v31 = vpop.f32.mrf.mxu1 }
 0x272   :  { %v3835_v30 = vadd.f32 %v1016_v31, %v807_v58 }
 0x273   :  { %v2995_v36 = vpop.f32.mrf.mxu1 }
 0x274   :  { %v1035_v38 = vadd.f32 %v2995_v36, %v2963_v3 }
 0x275   :  { %v1028_v40 = vpop.f32.mrf.mxu1 }
 0x276   :  { %v3839_v22 = vadd.f32 %v1028_v40, %v827_v26  ;;  %v3861_v26 = vpop.f32.mrf.mxu0  ;;  %v969_v40 = vadd.f32 %v968_v54, %v3807_v62 }
 0x277   :  { %v2998_v41 = vpop.f32.mrf.mxu1 }
 0x278   :  { %v1047_v44 = vadd.f32 %v2998_v41, %v2966_v11 }
 0x279   :  { %v1040_v49 = vpop.f32.mrf.mxu1 }
 0x27a   :  { %v3845_v51 = vadd.f32 %v1040_v49, %v847_v12 }
 0x27b   :  { %v3001_v37 = vpop.f32.mrf.mxu1 }
 0x27c   :  { %v1059_v25 = vadd.f32 %v3001_v37, %v2969_v28  ;;  %v3108_v28 = vpop.f32.mrf.mxu0 }
 0x27d   :  { %v1052_v60 = vpop.f32.mrf.mxu1 }
 0x27e   :  { %v3849_v35 = vadd.f32 %v1052_v60, %v867_v17  ;;  %v1688_v50 = vpop.f32.mrf.mxu0 }
 0x27f   :  { %v3012_v2 = vpop.f32.mrf.mxu1 }
 0x280   :  { %v1146_v41 = vadd.f32 %v3012_v2, %v975_v4  ;;  %v3111_v49 = vpop.f32.mrf.mxu0 }
 0x281   :  { %v1138_v7 = vpop.f32.mrf.mxu1 }
 0x282   :  { %v1139_v60 = vadd.f32 %v1138_v7, %v969_v40  ;;  %v1329_v62 = vadd.f32 %v3813_v47, %v1146_v41  ;;  %v1700_v54 = vpop.f32.mrf.mxu0 }
 0x283   :  { %v3015_v10 = vpop.f32.mrf.mxu1 }
 0x284   :  { %v1160_v59 = vadd.f32 %v3015_v10, %v3815_v8  ;;  %v1321_v55 = vadd.f32 %v3817_v16, %v1139_v60 }
 0x285   :  { %v1152_v43 = vpop.f32.mrf.mxu1 }
 0x286   :  { %v1153_v21 = vadd.f32 %v1152_v43, %v3819_v39  ;;  %v1345_v10 = vadd.f32 %v3821_v15, %v1160_v59  ;;  %v3114_v43 = vpop.f32.mrf.mxu0 }
 0x287   :  { %v3018_v45 = vpop.f32.mrf.mxu1 }
 0x289   :  { %v1166_v53 = vpop.f32.mrf.mxu1 }
 0x28b   :  { %v3021_v58 = vpop.f32.mrf.mxu1 }
 0x28c   :  { %v1188_v2 = vadd.f32 %v3021_v58, %v3827_v42 }
 0x28d   :  { %v1180_v3 = vpop.f32.mrf.mxu1 }
 0x28e   :  { %v1377_v16 = vadd.f32 %v3837_v33, %v1188_v2 }
 0x28f   :  { %v3024_v11 = vpop.f32.mrf.mxu1 }
 0x290   :  { %v1202_v8 = vadd.f32 %v3024_v11, %v3831_v13 }
 0x291   :  { %v1194_v12 = vpop.f32.mrf.mxu1 }
 0x292   :  { %v1195_v39 = vadd.f32 %v1194_v12, %v3835_v30 }
 0x293   :  { %v3027_v17 = vpop.f32.mrf.mxu1 }
 0x294   :  { %v1216_v61 = vadd.f32 %v3027_v17, %v1035_v38  ;;  %v993_v38 = vadd.f32 %v992_v29, %v3809_v52  ;;  %v1181_v52 = vadd.f32 %v1180_v3, %v1005_v20 }
 0x295   :  { %v1208_v32 = vpop.f32.mrf.mxu1 }
 0x296   :  { %v1209_v42 = vadd.f32 %v1208_v32, %v3839_v22  ;;  %v1369_v3 = vadd.f32 %v3841_v27, %v1181_v52  ;;  %v3893_v22 = vadd.f32 %v3847_v56, %v1195_v39  ;;  %v1712_v27 = vpop.f32.mrf.mxu0 }
 0x297   :  { %v3030_v34 = vpop.f32.mrf.mxu1 }
 0x298   :  { %v1230_v31 = vadd.f32 %v3030_v34, %v1047_v44  ;;  %v1174_v44 = vadd.f32 %v3018_v45, %v3823_v23  ;;  %v4458_v34 = vmov 0.0   ;;  %v1337_v23 = vadd.f32 %v3825_v18, %v1153_v21 }
 0x299   :  { %v1222_v36 = vpop.f32.mrf.mxu1  ;;  %3132 = vmatprep.subr.bf16.mxu1 %v4458_v34  ;;  %v3890_v18 = vadd.f32 %v3843_v46, %v1202_v8  ;;  %v3904_v46 = vadd.f32 %v3853_v9, %v1209_v42  ;;  %2479 = vst [vmem:[%s4450_s7] sm:$0x1] %v4458_v34  ;;  %2480 = vst [vmem:[%s4450_s7 + $0x1] sm:$0x1] %v4458_v34 }
 0x29a   :  { %v1361_v20 = vadd.f32 %v3829_v5, %v1174_v44  ;;  %v1223_v15 = vadd.f32 %v1222_v36, %v3845_v51  ;;  %v3896_v5 = vadd.f32 %v3851_v63, %v1216_v61  ;;  %v3907_v56 = vadd.f32 %v3855_v14, %v1230_v31  ;;  %2481 = vst [vmem:[%s4450_s7 + $0x2] sm:$0x1] %v4458_v34 }
 0x29b   :  { %v3033_v37 = vpop.f32.mrf.mxu1  ;;  %2482 = vst [vmem:[%s4450_s7 + $0x3] sm:$0x1] %v4458_v34  ;;  %2483 = vst [vmem:[%s4450_s7 + $0x4] sm:$0x1] %v4458_v34 }
 0x29c   :  { %v1244_v0 = vadd.f32 %v3033_v37, %v1059_v25  ;;  %v1167_v25 = vadd.f32 %v1166_v53, %v993_v38  ;;  %v3117_v38 = vpop.f32.mrf.mxu0  ;;  %2484 = vst [vmem:[%s4450_s7 + $0x5] sm:$0x1] %v4458_v34  ;;  %2485 = vst [vmem:[%s4450_s7 + $0x6] sm:$0x1] %v4458_v34 }
 0x29d   :  { %v1236_v17 = vpop.f32.mrf.mxu1  ;;  %2486 = vst [vmem:[%s4450_s7 + $0x7] sm:$0x1] %v4458_v34  ;;  %2487 = vst [vmem:[%s4450_s7 + $0x8] sm:$0x1] %v4458_v34 }
 0x29e   :  { %v1353_v53 = vadd.f32 %v3833_v24, %v1167_v25  ;;  %v1237_v51 = vadd.f32 %v1236_v17, %v3849_v35  ;;  %v3914_v35 = vadd.f32 %v3857_v48, %v1223_v15  ;;  %v3917_v37 = vadd.f32 %v3859_v57, %v1244_v0  ;;  %2488 = vst [vmem:[%s4450_s7 + $0x9] sm:$0x1] %v4458_v34 }
 0x29f   :  { %v3076_v7 = vpop.f32.mrf.mxu1  ;;  %2489 = vst [vmem:[%s4450_s7 + $0xa] sm:$0x1] %v4458_v34  ;;  %2490 = vst [vmem:[%s4450_s7 + $0xb] sm:$0x1] %v4458_v34 }
 0x2a0   :  { %v1530_v29 = vadd.f32 %v3076_v7, %v1329_v62  ;;  %2491 = vst [vmem:[%s4450_s7 + $0xc] sm:$0x1] %v4458_v34  ;;  %2492 = vst [vmem:[%s4450_s7 + $0xd] sm:$0x1] %v4458_v34 }
 0x2a1   :  { %v1523_v19 = vpop.f32.mrf.mxu1  ;;  %2493 = vst [vmem:[%s4450_s7 + $0xe] sm:$0x1] %v4458_v34  ;;  %2494 = vst [vmem:[%s4450_s7 + $0xf] sm:$0x1] %v4458_v34  ;;  %v4459_v34 = vlaneseq }
 0x2a2   :  { %v1695_v47 = vadd.f32 %v3108_v28, %v1530_v29  ;;  %v1524_v1 = vadd.f32 %v1523_v19, %v1321_v55  ;;  %v1724_v19 = vpop.f32.mrf.mxu0 }
 0x2a3   :  { %v3079_v45 = vpop.f32.mrf.mxu1 }
 0x2a4   :  { %v3885_v13 = vmul.f32 0.35355338, %v1695_v47  ;;  %v1689_v30 = vadd.f32 %v1688_v50, %v1524_v1  ;;  %v1542_v58 = vadd.f32 %v3079_v45, %v1345_v10 }
 0x2a5   :  { %v1535_v11 = vpop.f32.mrf.mxu1 }
 0x2a6   :  { %v1805_v24 = vsel %vm207_vm1, %v3885_v13, -inf  ;;  %v3900_v33 = vmul.f32 0.35355338, %v1689_v30  ;;  %v1707_v12 = vadd.f32 %v3111_v49, %v1542_v58  ;;  %v1536_v28 = vadd.f32 %v1535_v11, %v1337_v23 }
 0x2a7   :  { %v1806_v32 = vrot.slane %v1805_v24, 4  ;;  %v3082_v50 = vpop.f32.mrf.mxu1 }
 0x2a8   :  { %v1798_v63 = vsel %vm207_vm1, %v3900_v33, -inf  ;;  %v3911_v61 = vmul.f32 0.35355338, %v1707_v12  ;;  %v1701_v4 = vadd.f32 %v1700_v54, %v1536_v28  ;;  %v1554_v36 = vadd.f32 %v3082_v50, %v1361_v20  ;;  %v3120_v50 = vpop.f32.mrf.mxu0 }
 0x2a9   :  { %v1807_v40 = vmax.f32 %v1805_v24, %v1806_v32  ;;  %v1799_v41 = vrot.slane %v1798_v63, 4  ;;  %v1547_v49 = vpop.f32.mrf.mxu1  ;;  %v3924_v54 = vadd.f32 %v3861_v26, %v1237_v51 }
 0x2aa   :  { %v1819_v9 = vsel %vm207_vm1, %v3911_v61, -inf  ;;  %v3921_v14 = vmul.f32 0.35355338, %v1701_v4  ;;  %v1719_v31 = vadd.f32 %v3114_v43, %v1554_v36  ;;  %v1548_v60 = vadd.f32 %v1547_v49, %v1353_v53 }
 0x2ab   :  { %v1808_v17 = vrot.slane %v1807_v40, 2  ;;  %v1800_v59 = vmax.f32 %v1798_v63, %v1799_v41  ;;  %v1820_v21 = vrot.slane %v1819_v9, 4  ;;  %v3085_v62 = vpop.f32.mrf.mxu1 }
 0x2ac   :  { %v1812_v48 = vsel %vm207_vm1, %v3921_v14, -inf  ;;  %v3928_v0 = vmul.f32 0.35355338, %v1719_v31  ;;  %v1713_v57 = vadd.f32 %v1712_v27, %v1548_v60  ;;  %v1566_v44 = vadd.f32 %v3085_v62, %v1377_v16 }
 0x2ad   :  { %v1809_v25 = vmax.f32 %v1807_v40, %v1808_v17  ;;  %v1801_v2 = vrot.slane %v1800_v59, 2  ;;  %v1821_v7 = vmax.f32 %v1819_v9, %v1820_v21  ;;  %v1813_v52 = vrot.slane %v1812_v48, 4  ;;  %v1559_v29 = vpop.f32.mrf.mxu1 }
 0x2ae   :  { %v1833_v55 = vsel %vm207_vm1, %v3928_v0, -inf  ;;  %v3932_v8 = vmul.f32 0.35355338, %v1713_v57  ;;  %v1731_v39 = vadd.f32 %v3117_v38, %v1566_v44  ;;  %v1560_v26 = vadd.f32 %v1559_v29, %v1369_v3  ;;  %v1736_v57 = vpop.f32.mrf.mxu0 }
 0x2af   :  { %v1810_v47 = vrot.slane %v1809_v25, 1  ;;  %v1802_v1 = vmax.f32 %v1800_v59, %v1801_v2  ;;  %v1822_v10 = vrot.slane %v1821_v7, 2  ;;  %v1814_v23 = vmax.f32 %v1812_v48, %v1813_v52  ;;  %v3088_v53 = vpop.f32.mrf.mxu1 }
 0x2b0   :  { %v1834_v43 = vrot.slane %v1833_v55, 4  ;;  %v1826_v42 = vsel %vm207_vm1, %v3932_v8, -inf  ;;  %v3936_v45 = vmul.f32 0.35355338, %v1731_v39  ;;  %v1725_v20 = vadd.f32 %v1724_v19, %v1560_v26 }
 0x2b1   :  { %v1811_v16 = vmax.f32 %v1809_v25, %v1810_v47  ;;  %v1803_v30 = vrot.slane %v1802_v1, 1  ;;  %v1823_v58 = vmax.f32 %v1821_v7, %v1822_v10  ;;  %v1815_v15 = vrot.slane %v1814_v23, 2  ;;  %v1571_v41 = vpop.f32.mrf.mxu1 }
 0x2b2   :  { %v1835_v11 = vmax.f32 %v1833_v55, %v1834_v43  ;;  %v1827_v24 = vrot.slane %v1826_v42, 4  ;;  %v1847_v3 = vsel %vm207_vm1, %v3936_v45, -inf  ;;  %v3940_v12 = vmul.f32 0.35355338, %v1725_v20 }
 0x2b3   :  { %v1911_v28 = vsub.f32 %v3885_v13, %v1811_v16  ;;  %v1804_v27 = vmax.f32 %v1802_v1, %v1803_v30  ;;  %v1824_v51 = vrot.slane %v1823_v58, 1  ;;  %v1816_v32 = vmax.f32 %v1814_v23, %v1815_v15  ;;  %v3091_v52 = vpop.f32.mrf.mxu1  ;;  %v3123_v23 = vpop.f32.mrf.mxu0 }
 0x2b4   :  { %v1836_v63 = vrot.slane %v1835_v11, 2  ;;  %v1828_v4 = vmax.f32 %v1826_v42, %v1827_v24  ;;  %v1848_v36 = vrot.slane %v1847_v3, 4  ;;  %v1840_v40 = vsel %vm207_vm1, %v3940_v12, -inf }
 0x2b5   :  { %v1928_v49 = vmul.f32 1.442695, %v1911_v28  ;;  %v1910_v9 = vsub.f32 %v3900_v33, %v1804_v27  ;;  %v1825_v31 = vmax.f32 %v1823_v58, %v1824_v51  ;;  %v1817_v60 = vrot.slane %v1816_v32, 1  ;;  %v1583_v30 = vpop.f32.mrf.mxu1  ;;  %v1748_v27 = vpop.f32.mrf.mxu0 }
 0x2b6   :  { %v1837_v38 = vmax.f32 %v1835_v11, %v1836_v63  ;;  %v1829_v17 = vrot.slane %v1828_v4, 2  ;;  %v1849_v59 = vmax.f32 %v1847_v3, %v1848_v36  ;;  %v1841_v13 = vrot.slane %v1840_v40, 4 }
 0x2b7   :  { %3147 = vpow2.f32 %v1928_v49  ;;  %v1926_v21 = vmul.f32 1.442695, %v1910_v9  ;;  %v1913_v62 = vsub.f32 %v3911_v61, %v1825_v31  ;;  %v1818_v48 = vmax.f32 %v1816_v32, %v1817_v60  ;;  %v3146_v60 = vld [vmem:[%s4449_s5] sm:$0xff]  }
 0x2b8   :  { %v1838_v44 = vrot.slane %v1837_v38, 1  ;;  %v1830_v25 = vmax.f32 %v1828_v4, %v1829_v17  ;;  %v1850_v2 = vrot.slane %v1849_v59, 2  ;;  %v1842_v7 = vmax.f32 %v1840_v40, %v1841_v13  ;;  %v3126_v17 = vpop.f32.mrf.mxu0  ;;  %3133 = vmatpush3.bf16.msra.mxu1 %v3146_v60 }
 0x2b9   :  { %3149 = vpow2.f32 %v1926_v21  ;;  %v1932_v29 = vmul.f32 1.442695, %v1913_v62  ;;  %v1912_v33 = vsub.f32 %v3921_v14, %v1818_v48  ;;  %v1578_v55 = vadd.f32 %v3088_v53, %v3890_v18 }
 0x2ba   :  { %v1839_v39 = vmax.f32 %v1837_v38, %v1838_v44  ;;  %v1831_v26 = vrot.slane %v1830_v25, 1  ;;  %v1851_v19 = vmax.f32 %v1849_v59, %v1850_v2  ;;  %v1843_v47 = vrot.slane %v1842_v7, 2 }
 0x2bb   :  { %3151 = vpow2.f32 %v1932_v29  ;;  %v1930_v1 = vmul.f32 1.442695, %v1912_v33  ;;  %v1743_v61 = vadd.f32 %v3120_v50, %v1578_v55  ;;  %v1572_v10 = vadd.f32 %v1571_v41, %v3893_v22 }
 0x2bc   :  { %v1915_v43 = vsub.f32 %v3928_v0, %v1839_v39  ;;  %v1832_v42 = vmax.f32 %v1830_v25, %v1831_v26  ;;  %v1852_v20 = vrot.slane %v1851_v19, 1  ;;  %v1844_v16 = vmax.f32 %v1842_v7, %v1843_v47 }
 0x2bd   :  { %3153 = vpow2.f32 %v1930_v1  ;;  %v3951_v14 = vmul.f32 0.35355338, %v1743_v61  ;;  %v1737_v18 = vadd.f32 %v1736_v57, %v1572_v10  ;;  %v1590_v53 = vadd.f32 %v3091_v52, %v3896_v5  ;;  %v3094_v5 = vpop.f32.mrf.mxu1 }
 0x2be   :  { %v1936_v58 = vmul.f32 1.442695, %v1915_v43  ;;  %v1914_v15 = vsub.f32 %v3932_v8, %v1832_v42  ;;  %v1853_v11 = vmax.f32 %v1851_v19, %v1852_v20  ;;  %v1845_v24 = vrot.slane %v1844_v16, 1  ;;  %v1760_v20 = vpop.f32.mrf.mxu0 }
 0x2bf   :  { %v1861_v22 = vsel %vm207_vm1, %v3951_v14, -inf  ;;  %v3957_v3 = vmul.f32 0.35355338, %v1737_v18  ;;  %v1755_v0 = vadd.f32 %v3123_v23, %v1590_v53  ;;  %v1584_v28 = vadd.f32 %v1583_v30, %v3904_v46  ;;  %v1595_v57 = vpop.f32.mrf.mxu1 }
 0x2c0   :  { %3155 = vpow2.f32 %v1936_v58  ;;  %v1934_v51 = vmul.f32 1.442695, %v1914_v15  ;;  %v1917_v32 = vsub.f32 %v3936_v45, %v1853_v11  ;;  %v1846_v50 = vmax.f32 %v1844_v16, %v1845_v24 }
 0x2c1   :  { %v1862_v63 = vrot.slane %v1861_v22, 4  ;;  %v1854_v8 = vsel %vm207_vm1, %v3957_v3, -inf  ;;  %v3963_v4 = vmul.f32 0.35355338, %v1755_v0  ;;  %v1749_v36 = vadd.f32 %v1748_v27, %v1584_v28  ;;  %v3097_v58 = vpop.f32.mrf.mxu1 }
 0x2c2   :  { %3157 = vpow2.f32 %v1934_v51  ;;  %v1940_v40 = vmul.f32 1.442695, %v1917_v32  ;;  %v1916_v41 = vsub.f32 %v3940_v12, %v1846_v50  ;;  %v1855_v49 = vrot.slane %v1854_v8, 4 }
 0x2c3   :  { %v1863_v46 = vmax.f32 %v1861_v22, %v1862_v63  ;;  %v1875_v9 = vsel %vm207_vm1, %v3963_v4, -inf  ;;  %v3968_v31 = vmul.f32 0.35355338, %v1749_v36  ;;  %v1602_v45 = vadd.f32 %v3094_v5, %v3907_v56 }
 0x2c4   :  { %v3974_v38 = vpop.eup %3147  ;;  %3159 = vpow2.f32 %v1940_v40  ;;  %v1938_v59 = vmul.f32 1.442695, %v1916_v41  ;;  %v1856_v13 = vmax.f32 %v1854_v8, %v1855_v49  ;;  %v1876_v12 = vrot.slane %v1875_v9, 4 }
 0x2c5   :  { %v3978_v21 = vsel %vm207_vm1, %v3974_v38, 0.0  ;;  %v1864_v62 = vrot.slane %v1863_v46, 2  ;;  %v1868_v48 = vsel %vm207_vm1, %v3968_v31, -inf  ;;  %v1767_v56 = vadd.f32 %v3126_v17, %v1602_v45 }
 0x2c6   :  { %v3982_v44 = vpop.eup %3149  ;;  %v1966_v25 = vrot.slane %v3978_v21, 4  ;;  %3161 = vpow2.f32 %v1938_v59  ;;  %v1857_v2 = vrot.slane %v1856_v13, 2  ;;  %v1877_v7 = vmax.f32 %v1875_v9, %v1876_v12 }
 0x2c7   :  { %v3987_v52 = vsel %vm207_vm1, %v3982_v44, 0.0  ;;  %v1865_v29 = vmax.f32 %v1863_v46, %v1864_v62  ;;  %v1869_v33 = vrot.slane %v1868_v48, 4  ;;  %v3989_v55 = vmul.f32 0.35355338, %v1767_v56  ;;  %v1607_v56 = vpop.f32.mrf.mxu1 }
 0x2c8   :  { %v3991_v39 = vpop.eup %3151  ;;  %v1959_v26 = vrot.slane %v3987_v52, 4  ;;  %v1858_v19 = vmax.f32 %v1856_v13, %v1857_v2  ;;  %v1878_v47 = vrot.slane %v1877_v7, 2  ;;  %v1596_v1 = vadd.f32 %v1595_v57, %v3914_v35 }
 0x2c9   :  { %v3997_v61 = vsel %vm207_vm1, %v3991_v39, 0.0  ;;  %v1866_v10 = vrot.slane %v1865_v29, 1  ;;  %v1870_v23 = vmax.f32 %v1868_v48, %v1869_v33  ;;  %v1889_v43 = vsel %vm207_vm1, %v3989_v55, -inf }
 0x2ca   :  { %v4001_v42 = vpop.eup %3153  ;;  %v1980_v16 = vrot.slane %v3997_v61, 4  ;;  %v1859_v30 = vrot.slane %v1858_v19, 1  ;;  %v1879_v18 = vmax.f32 %v1877_v7, %v1878_v47  ;;  %v1890_v53 = vrot.slane %v1889_v43, 4 }
 0x2cb   :  { %v4006_v35 = vsel %vm207_vm1, %v4001_v42, 0.0  ;;  %v1867_v15 = vmax.f32 %v1865_v29, %v1866_v10  ;;  %v1871_v11 = vrot.slane %v1870_v23, 2  ;;  %v1761_v24 = vadd.f32 %v1760_v20, %v1596_v1 }
 0x2cc   :  { %v1973_v22 = vrot.slane %v4006_v35, 4  ;;  %v1860_v0 = vmax.f32 %v1858_v19, %v1859_v30  ;;  %v1880_v28 = vrot.slane %v1879_v18, 1  ;;  %v1891_v27 = vmax.f32 %v1889_v43, %v1890_v53 }
 0x2cd   :  { %v4009_v51 = vpop.eup %3155  ;;  %v1919_v32 = vsub.f32 %v3951_v14, %v1867_v15  ;;  %v1872_v50 = vmax.f32 %v1870_v23, %v1871_v11  ;;  %v4012_v5 = vmul.f32 0.35355338, %v1761_v24  ;;  %v1614_v63 = vadd.f32 %v3097_v58, %v3917_v37 }
 0x2ce   :  { %v4017_v8 = vsel %vm207_vm1, %v4009_v51, 0.0  ;;  %v1918_v36 = vsub.f32 %v3957_v3, %v1860_v0  ;;  %v1881_v40 = vmax.f32 %v1879_v18, %v1880_v28  ;;  %v1892_v41 = vrot.slane %v1891_v27, 2  ;;  %v3129_v3 = vpop.f32.mrf.mxu0 }
 0x2cf   :  { %v4020_v49 = vpop.eup %3157  ;;  %v1994_v46 = vrot.slane %v4017_v8, 4  ;;  %v1944_v9 = vmul.f32 1.442695, %v1919_v32  ;;  %v1873_v45 = vrot.slane %v1872_v50, 1  ;;  %v1882_v14 = vsel %vm207_vm1, %v4012_v5, -inf }
 0x2d0   :  { %v1986_v37 = vsel %vm207_vm1, %v4020_v49, 0.0  ;;  %v1942_v60 = vmul.f32 1.442695, %v1918_v36  ;;  %v1921_v17 = vsub.f32 %v3963_v4, %v1881_v40  ;;  %v1893_v59 = vmax.f32 %v1891_v27, %v1892_v41  ;;  %v1772_v43 = vpop.f32.mrf.mxu0 }
 0x2d1   :  { %v4028_v13 = vpop.eup %3159  ;;  %v1987_v12 = vrot.slane %v1986_v37, 4  ;;  %3163 = vpow2.f32 %v1944_v9  ;;  %v1874_v62 = vmax.f32 %v1872_v50, %v1873_v45  ;;  %v1883_v48 = vrot.slane %v1882_v14, 4  ;;  %v4060_v50 = vpop.permute.xlu0 %2166 }
 0x2d2   :  { %v4032_v57 = vsel %vm207_vm1, %v4028_v13, 0.0  ;;  %3165 = vpow2.f32 %v1942_v60  ;;  %v1948_v2 = vmul.f32 1.442695, %v1921_v17  ;;  %v1894_v7 = vrot.slane %v1893_v59, 1 }
 0x2d3   :  { %v4034_v29 = vpop.eup %3161  ;;  %v2008_v4 = vrot.slane %v4032_v57, 4  ;;  %v1920_v33 = vsub.f32 %v3968_v31, %v1874_v62  ;;  %v1884_v19 = vmax.f32 %v1882_v14, %v1883_v48  ;;  %v1779_v47 = vadd.f32 %v3129_v3, %v1614_v63 }
 0x2d4   :  { %v4040_v1 = vsel %vm207_vm1, %v4034_v29, 0.0  ;;  %3167 = vpow2.f32 %v1948_v2  ;;  %v1895_v10 = vmax.f32 %v1893_v59, %v1894_v7  ;;  %v1608_v23 = vadd.f32 %v1607_v56, %v3924_v54 }
 0x2d5   :  { %v2001_v20 = vrot.slane %v4040_v1, 4  ;;  %v1946_v30 = vmul.f32 1.442695, %v1920_v33  ;;  %v1885_v18 = vrot.slane %v1884_v19, 2  ;;  %v4044_v53 = vmul.f32 0.35355338, %v1779_v47 }
 0x2d6   :  { %v1923_v58 = vsub.f32 %v3989_v55, %v1895_v10  ;;  %v1773_v31 = vadd.f32 %v1772_v43, %v1608_v23  ;;  %v1967_v15 = vadd.f32 %v1966_v25, %v3978_v21  ;;  %v1960_v11 = vadd.f32 %v1959_v26, %v3987_v52 }
 0x2d7   :  { %3169 = vpow2.f32 %v1946_v30  ;;  %v1886_v54 = vmax.f32 %v1884_v19, %v1885_v18  ;;  %v1903_v24 = vsel %vm207_vm1, %v4044_v53, -inf  ;;  %v1981_v0 = vadd.f32 %v1980_v16, %v3997_v61  ;;  %v4072_v19 = vpop.permute.xlu0 %2182 }
 0x2d8   :  { %v1952_v28 = vmul.f32 1.442695, %v1923_v58  ;;  %v1904_v55 = vrot.slane %v1903_v24, 4  ;;  %v4058_v27 = vmul.f32 0.35355338, %v1773_v31  ;;  %v1968_v32 = vrot.slane %v1967_v15, 2 }
 0x2d9   :  { %v1887_v21 = vrot.slane %v1886_v54, 1  ;;  %v1961_v25 = vrot.slane %v1960_v11, 2  ;;  %v1982_v63 = vrot.slane %v1981_v0, 2  ;;  %v1988_v52 = vadd.f32 %v1987_v12, %v1986_v37 }
 0x2da   :  { %3171 = vpow2.f32 %v1952_v28  ;;  %v1905_v26 = vmax.f32 %v1903_v24, %v1904_v55  ;;  %v1896_v36 = vsel %vm207_vm1, %v4058_v27, -inf  ;;  %v1969_v40 = vadd.f32 %v1968_v32, %v1967_v15 }
 0x2db   :  { %v1888_v41 = vmax.f32 %v1886_v54, %v1887_v21  ;;  %v1897_v9 = vrot.slane %v1896_v36, 4  ;;  %v1962_v61 = vadd.f32 %v1961_v25, %v1960_v11  ;;  %v1983_v16 = vadd.f32 %v1982_v63, %v1981_v0 }
 0x2dc   :  { %v1906_v45 = vrot.slane %v1905_v26, 2  ;;  %v1970_v14 = vrot.slane %v1969_v40, 1  ;;  %v1989_v60 = vrot.slane %v1988_v52, 2  ;;  %v1974_v17 = vadd.f32 %v1973_v22, %v4006_v35 }
 0x2dd   :  { %v1922_v59 = vsub.f32 %v4012_v5, %v1888_v41  ;;  %v1898_v37 = vmax.f32 %v1896_v36, %v1897_v9  ;;  %v1963_v3 = vrot.slane %v1962_v61, 1  ;;  %v1984_v12 = vrot.slane %v1983_v16, 1 }
 0x2de   :  { %v4068_v62 = vpop.eup %3163  ;;  %v1907_v48 = vmax.f32 %v1905_v26, %v1906_v45  ;;  %v1971_v56 = vadd.f32 %v1970_v14, %v1969_v40  ;;  %v1990_v2 = vadd.f32 %v1989_v60, %v1988_v52  ;;  %v1975_v7 = vrot.slane %v1974_v17, 2  ;;  %v4091_v52 = vpop.permute.xlu0 %2170 }
 0x2df   :  { %v4070_v33 = vpop.eup %3165  ;;  %v2021_v47 = vsel %vm207_vm1, %v4068_v62, 0.0  ;;  %v1950_v10 = vmul.f32 1.442695, %v1922_v59  ;;  %v1899_v35 = vrot.slane %v1898_v37, 2  ;;  %v1964_v22 = vadd.f32 %v1963_v3, %v1962_v61 }
 0x2e0   :  { %v2022_v5 = vrot.slane %v2021_v47, 4  ;;  %v2014_v23 = vsel %vm207_vm1, %v4070_v33, 0.0  ;;  %v1908_v43 = vrot.slane %v1907_v48, 1  ;;  %3173 = vrcp.f32 %v1971_v56 }
 0x2e1   :  { %v4078_v30 = vpop.eup %3167  ;;  %v2015_v18 = vrot.slane %v2014_v23, 4  ;;  %3175 = vpow2.f32 %v1950_v10  ;;  %v1900_v58 = vmax.f32 %v1898_v37, %v1899_v35  ;;  %v1985_v31 = vadd.f32 %v1984_v12, %v1983_v16 }
 0x2e2   :  { %v2035_v15 = vsel %vm207_vm1, %v4078_v30, 0.0  ;;  %v1909_v11 = vmax.f32 %v1907_v48, %v1908_v43  ;;  %3177 = vrcp.f32 %v1964_v22  ;;  %v1991_v54 = vrot.slane %v1990_v2, 1 }
 0x2e3   :  { %v2036_v24 = vrot.slane %v2035_v15, 4  ;;  %v1901_v0 = vrot.slane %v1900_v58, 1  ;;  %3179 = vrcp.f32 %v1985_v31  ;;  %v1976_v28 = vadd.f32 %v1975_v7, %v1974_v17 }
 0x2e4   :  { %v4082_v55 = vpop.eup %3169  ;;  %v1925_v32 = vsub.f32 %v4044_v53, %v1909_v11  ;;  %v1992_v21 = vadd.f32 %v1991_v54, %v1990_v2  ;;  %v2002_v25 = vadd.f32 %v2001_v20, %v4040_v1  ;;  %v1995_v63 = vadd.f32 %v1994_v46, %v4017_v8 }
 0x2e5   :  { %v2028_v26 = vsel %vm207_vm1, %v4082_v55, 0.0  ;;  %v1902_v36 = vmax.f32 %v1900_v58, %v1901_v0  ;;  %v1977_v40 = vrot.slane %v1976_v28, 1  ;;  %v2016_v41 = vadd.f32 %v2015_v18, %v2014_v23 }
 0x2e6   :  { %v2029_v9 = vrot.slane %v2028_v26, 4  ;;  %v1956_v61 = vmul.f32 1.442695, %v1925_v32  ;;  %3181 = vrcp.f32 %v1992_v21  ;;  %v2003_v53 = vrot.slane %v2002_v25, 2 }
 0x2e7   :  { %v4095_v16 = vpop.eup %3171  ;;  %v1924_v1 = vsub.f32 %v4058_v27, %v1902_v36  ;;  %v1978_v20 = vadd.f32 %v1977_v40, %v1976_v28  ;;  %v1996_v45 = vrot.slane %v1995_v63, 2  ;;  %v2017_v14 = vrot.slane %v2016_v41, 2  ;;  %v2173_v27 = vpop.permute.xlu0 %2172 }
 0x2e8   :  { %3183 = vpow2.f32 %v1956_v61  ;;  %v2004_v8 = vadd.f32 %v2003_v53, %v2002_v25  ;;  %v2009_v46 = vadd.f32 %v2008_v4, %v4032_v57  ;;  %v2049_v60 = vsel %vm207_vm1, %v4095_v16, 0.0 }
 0x2e9   :  { %v1954_v17 = vmul.f32 1.442695, %v1924_v1  ;;  %3185 = vrcp.f32 %v1978_v20  ;;  %v1997_v59 = vadd.f32 %v1996_v45, %v1995_v63  ;;  %v2018_v3 = vadd.f32 %v2017_v14, %v2016_v41 }
 0x2ea   :  { %v2005_v37 = vrot.slane %v2004_v8, 1  ;;  %v2010_v12 = vrot.slane %v2009_v46, 2  ;;  %v2030_v48 = vadd.f32 %v2029_v9, %v2028_v26  ;;  %v2023_v2 = vadd.f32 %v2022_v5, %v2021_v47  ;;  %v2169_v5 = vpop.permute.xlu1 %2168 }
 0x2eb   :  { %3187 = vpow2.f32 %v1954_v17  ;;  %v1998_v56 = vrot.slane %v1997_v59, 1  ;;  %v4103_v7 = vadd.f32 %v2036_v24, %v2035_v15  ;;  %v2019_v35 = vrot.slane %v2018_v3, 1  ;;  %v2175_v36 = vpop.permute.xlu0 %2174 }
 0x2ec   :  { %v2006_v10 = vadd.f32 %v2005_v37, %v2004_v8  ;;  %v2011_v22 = vadd.f32 %v2010_v12, %v2009_v46  ;;  %v2031_v57 = vrot.slane %v2030_v48, 2  ;;  %v2050_v23 = vrot.slane %v2049_v60, 4 }
 0x2ed   :  { %v3174_v4 = vpop.eup %3173  ;;  %v1999_v43 = vadd.f32 %v1998_v56, %v1997_v59  ;;  %v2024_v18 = vrot.slane %v2023_v2, 2  ;;  %v2038_v58 = vrot.slane %v4103_v7, 2  ;;  %v2020_v54 = vadd.f32 %v2019_v35, %v2018_v3 }
 0x2ee   :  { %v4106_v31 = vpop.eup %3175  ;;  %v2087_v11 = vmul.f32 %v3174_v4, %v3974_v38  ;;  %3189 = vrcp.f32 %v2006_v10  ;;  %v2012_v0 = vrot.slane %v2011_v22, 1  ;;  %v2032_v24 = vadd.f32 %v2031_v57, %v2030_v48 }
 0x2ef   :  { %v3178_v47 = vpop.eup %3177  ;;  %v2042_v15 = vsel %vm207_vm1, %v4106_v31, 0.0  ;;  %3191 = vrcp.f32 %v1999_v43  ;;  %v2025_v28 = vadd.f32 %v2024_v18, %v2023_v2  ;;  %v4118_v8 = vadd.f32 %v2050_v23, %v2049_v60  ;;  %v2177_v10 = vpop.permute.xlu0 %2176 }
 0x2f0   :  { %v3180_v32 = vpop.eup %3179  ;;  %v2043_v21 = vrot.slane %v2042_v15, 4  ;;  %v2105_v25 = vsel %vm207_vm1, %v2087_v11, 0.0  ;;  %v2215_v63 = vmul.f32 %v2169_v5, %v2087_v11  ;;  %v2086_v26 = vmul.f32 %v3178_v47, %v3982_v44 }
 0x2f1   :  { %2106 = vadd.xlane.f32.xlu1 %v2105_v25  ;;  %v2089_v38 = vmul.f32 %v3180_v32, %v3991_v39  ;;  %3193 = vrcp.f32 %v2020_v54  ;;  %v2013_v40 = vadd.f32 %v2012_v0, %v2011_v22  ;;  %v2033_v41 = vrot.slane %v2032_v24, 1 }
 0x2f2   :  { %v2237_v9 = vsel %vm207_vm1, %v2215_v63, 0.0  ;;  %v2102_v61 = vsel %vm207_vm1, %v2086_v26, 0.0  ;;  %v2214_v53 = vmul.f32 %v4060_v50, %v2086_v26  ;;  %v2026_v1 = vrot.slane %v2025_v28, 1 }
 0x2f3   :  { %v3182_v20 = vpop.eup %3181  ;;  %v2238_v45 = vrot.slane %v2237_v9, 4  ;;  %2103 = vadd.xlane.f32.xlu0 %v2102_v61  ;;  %v2111_v14 = vsel %vm207_vm1, %v2089_v38, 0.0  ;;  %v2217_v44 = vmul.f32 %v2173_v27, %v2089_v38  ;;  %3195 = vrcp.f32 %v2013_v40 }
 0x2f4   :  { %v2230_v39 = vsel %vm207_vm1, %v2214_v53, 0.0  ;;  %v2090_v46 = vmul.f32 %v3182_v20, %v4020_v49  ;;  %v2034_v17 = vadd.f32 %v2033_v41, %v2032_v24  ;;  %v2044_v12 = vadd.f32 %v2043_v21, %v2042_v15  ;;  %v2179_v41 = vpop.permute.xlu0 %2178 }
 0x2f5   :  { %v4122_v59 = vpop.eup %3183  ;;  %v2239_v37 = vadd.f32 %v2238_v45, %v2237_v9  ;;  %v2231_v3 = vrot.slane %v2230_v39, 4  ;;  %v2251_v50 = vsel %vm207_vm1, %v2217_v44, 0.0  ;;  %v2027_v60 = vadd.f32 %v2026_v1, %v2025_v28 }
 0x2f6   :  { %v3186_v48 = vpop.eup %3185  ;;  %v2252_v56 = vrot.slane %v2251_v50, 4  ;;  %v2114_v2 = vsel %vm207_vm1, %v2090_v46, 0.0  ;;  %v2218_v27 = vmul.f32 %v2175_v36, %v2090_v46  ;;  %v4128_v35 = vsel %vm207_vm1, %v4122_v59, 0.0 }
 0x2f7   :  { %v2240_v49 = vrot.slane %v2239_v37, 2  ;;  %v2232_v22 = vadd.f32 %v2231_v3, %v2230_v39  ;;  %2112 = vadd.xlane.f32.xlu0 %v2111_v14  ;;  %2115 = vadd.xlane.f32.xlu1 %v2114_v2  ;;  %v2088_v57 = vmul.f32 %v3186_v48, %v4001_v42  ;;  %3197 = vrcp.f32 %v2034_v17 }
 0x2f8   :  { %v4131_v4 = vpop.eup %3187  ;;  %v2253_v23 = vadd.f32 %v2252_v56, %v2251_v50  ;;  %v2258_v43 = vsel %vm207_vm1, %v2218_v27, 0.0  ;;  %v2045_v18 = vrot.slane %v2044_v12, 2  ;;  %3199 = vrcp.f32 %v2027_v60 }
 0x2f9   :  { %v4136_v11 = vsel %vm207_vm1, %v4131_v4, 0.0  ;;  %v2241_v54 = vadd.f32 %v2240_v49, %v2239_v37  ;;  %v2233_v0 = vrot.slane %v2232_v22, 2  ;;  %v2259_v47 = vrot.slane %v2258_v43, 4  ;;  %v2185_v49 = vpop.permute.xlu1 %2184 }
 0x2fa   :  { %v2057_v5 = vrot.slane %v4136_v11, 4  ;;  %v2254_v15 = vrot.slane %v2253_v23, 2  ;;  %v2108_v42 = vsel %vm207_vm1, %v2088_v57, 0.0  ;;  %v2216_v24 = vmul.f32 %v4091_v52, %v2088_v57 }
 0x2fb   :  { %v3190_v28 = vpop.eup %3189  ;;  %v2242_v32 = vrot.slane %v2241_v54, 1  ;;  %v2234_v21 = vadd.f32 %v2233_v0, %v2232_v22  ;;  %v2260_v25 = vadd.f32 %v2259_v47, %v2258_v43  ;;  %2109 = vadd.xlane.f32.xlu0 %v2108_v42  ;;  %v4143_v40 = vadd.f32 %v2045_v18, %v2044_v12 }
 0x2fc   :  { %v3192_v63 = vpop.eup %3191  ;;  %v2255_v26 = vadd.f32 %v2254_v15, %v2253_v23  ;;  %v2244_v36 = vsel %vm207_vm1, %v2216_v24, 0.0  ;;  %v2092_v38 = vmul.f32 %v3190_v28, %v4034_v29 }
 0x2fd   :  { %v2243_v9 = vadd.f32 %v2242_v32, %v2241_v54  ;;  %v2235_v61 = vrot.slane %v2234_v21, 1  ;;  %v2261_v53 = vrot.slane %v2260_v25, 2  ;;  %v2245_v1 = vrot.slane %v2244_v36, 4 }
 0x2fe   :  { %v3194_v52 = vpop.eup %3193  ;;  %v2256_v20 = vrot.slane %v2255_v26, 1  ;;  %v2120_v45 = vsel %vm207_vm1, %v2092_v38, 0.0  ;;  %v2220_v14 = vmul.f32 %v2179_v41, %v2092_v38  ;;  %v2091_v44 = vmul.f32 %v3192_v63, %v4009_v51  ;;  %v2181_v38 = vpop.permute.xlu0 %2180 }
 0x2ff   :  { %v2343_v39 = vpack.c.bf16 %v2243_v9, %v2243_v9  ;;  %v2236_v46 = vadd.f32 %v2235_v61, %v2234_v21  ;;  %v2262_v17 = vadd.f32 %v2261_v53, %v2260_v25  ;;  %v2246_v37 = vadd.f32 %v2245_v1, %v2244_v36  ;;  %2121 = vadd.xlane.f32.xlu1 %v2120_v45  ;;  %v2187_v1 = vpop.permute.xlu1 %2186 }
 0x300   :  { %v2257_v29 = vadd.f32 %v2256_v20, %v2255_v26  ;;  %v2272_v3 = vsel %vm207_vm1, %v2220_v14, 0.0  ;;  %v2117_v50 = vsel %vm207_vm1, %v2091_v44, 0.0  ;;  %v2219_v12 = vmul.f32 %v2177_v10, %v2091_v44  ;;  %v3196_v48 = vpop.eup %3195 }
 0x301   :  { %v2386_v56 = vunpack.c.l.b16 %v2343_v39  ;;  %v2342_v2 = vpack.c.bf16 %v2236_v46, %v2236_v46  ;;  %v2263_v27 = vrot.slane %v2262_v17, 1  ;;  %v2247_v60 = vrot.slane %v2246_v37, 2  ;;  %2118 = vadd.xlane.f32.xlu0 %v2117_v50 }
 0x302   :  { %v2345_v22 = vpack.c.bf16 %v2257_v29, %v2257_v29  ;;  %v2273_v51 = vrot.slane %v2272_v3, 4  ;;  %v2265_v57 = vsel %vm207_vm1, %v2219_v12, 0.0  ;;  %v2094_v23 = vmul.f32 %v3194_v52, %v4070_v33 }
 0x303   :  { %v2385_v43 = vunpack.c.l.b16 %v2342_v2  ;;  %v2264_v18 = vadd.f32 %v2263_v27, %v2262_v17  ;;  %v2248_v54 = vadd.f32 %v2247_v60, %v2246_v37  ;;  %v2266_v0 = vrot.slane %v2265_v57, 4 }
 0x304   :  { %v2388_v10 = vunpack.c.l.b16 %v2345_v22  ;;  %v2274_v47 = vadd.f32 %v2273_v51, %v2272_v3  ;;  %v2126_v15 = vsel %vm207_vm1, %v2094_v23, 0.0  ;;  %v2222_v42 = vmul.f32 %v4072_v19, %v2094_v23  ;;  %v3198_v24 = vpop.eup %3197 }
 0x305   :  { %v2402_v28 = vsel %vm2401_vm2, %v2386_v56, %v2385_v43  ;;  %v2346_v32 = vpack.c.bf16 %v2264_v18, %v2264_v18  ;;  %v2249_v21 = vrot.slane %v2248_v54, 1  ;;  %v2267_v25 = vadd.f32 %v2266_v0, %v2265_v57  ;;  %2127 = vadd.xlane.f32.xlu1 %v2126_v15  ;;  %v3200_v19 = vpop.eup %3199 }
 0x306   :  { %v2275_v33 = vrot.slane %v2274_v47, 2  ;;  %v2286_v63 = vsel %vm207_vm1, %v2222_v42, 0.0  ;;  %v2093_v26 = vmul.f32 %v3196_v48, %v4028_v13  ;;  %v2096_v36 = vmul.f32 %v3198_v24, %v4082_v55 }
 0x307   :  { %v2389_v41 = vunpack.c.l.b16 %v2346_v32  ;;  %v2250_v9 = vadd.f32 %v2249_v21, %v2248_v54  ;;  %v2268_v61 = vrot.slane %v2267_v25, 2  ;;  %v2287_v53 = vrot.slane %v2286_v63, 4 }
 0x308   :  { %v2276_v52 = vadd.f32 %v2275_v33, %v2274_v47  ;;  %v2123_v20 = vsel %vm207_vm1, %v2093_v26, 0.0  ;;  %v2221_v45 = vmul.f32 %v2181_v38, %v2093_v26  ;;  %v2132_v14 = vsel %vm207_vm1, %v2096_v36, 0.0 }
 0x309   :  { %v2344_v44 = vpack.c.bf16 %v2250_v9, %v2250_v9  ;;  %v2269_v39 = vadd.f32 %v2268_v61, %v2267_v25  ;;  %v2288_v46 = vadd.f32 %v2287_v53, %v2286_v63  ;;  %2124 = vadd.xlane.f32.xlu0 %v2123_v20  ;;  %v2224_v13 = vmul.f32 %v2187_v1, %v2096_v36 }
 0x30a   :  { %v2277_v55 = vrot.slane %v2276_v52, 1  ;;  %v2279_v17 = vsel %vm207_vm1, %v2221_v45, 0.0  ;;  %2133 = vadd.xlane.f32.xlu1 %v2132_v14  ;;  %v2095_v37 = vmul.f32 %v3200_v19, %v4068_v62  ;;  %v2047_v29 = vrot.slane %v4143_v40, 1 }
 0x30b   :  { %v2387_v3 = vunpack.c.l.b16 %v2344_v44  ;;  %v2270_v50 = vrot.slane %v2269_v39, 1  ;;  %v2289_v12 = vrot.slane %v2288_v46, 2  ;;  %v2280_v48 = vrot.slane %v2279_v17, 4 }
 0x30c   :  { %v2278_v56 = vadd.f32 %v2277_v55, %v2276_v52  ;;  %v2300_v2 = vsel %vm207_vm1, %v2224_v13, 0.0  ;;  %v2129_v27 = vsel %vm207_vm1, %v2095_v37, 0.0  ;;  %v2223_v60 = vmul.f32 %v2185_v49, %v2095_v37 }
 0x30d   :  { %v2404_v22 = vsel %vm2403_vm3, %v2387_v3, %v2402_v28  ;;  %v2271_v51 = vadd.f32 %v2270_v50, %v2269_v39  ;;  %v2290_v57 = vadd.f32 %v2289_v12, %v2288_v46  ;;  %v2281_v23 = vadd.f32 %v2280_v48, %v2279_v17  ;;  %2130 = vadd.xlane.f32.xlu0 %v2129_v27 }
 0x30e   :  { %v2406_v62 = vsel %vm2405_vm4, %v2388_v10, %v2404_v22  ;;  %v2348_v43 = vpack.c.bf16 %v2278_v56, %v2278_v56  ;;  %v2301_v18 = vrot.slane %v2300_v2, 4  ;;  %v2293_v54 = vsel %vm207_vm1, %v2223_v60, 0.0 }
 0x30f   :  { %v2347_v0 = vpack.c.bf16 %v2271_v51, %v2271_v51  ;;  %v2408_v47 = vsel %vm2407_vm5, %v2389_v41, %v2406_v62  ;;  %v2291_v15 = vrot.slane %v2290_v57, 1  ;;  %v2282_v42 = vrot.slane %v2281_v23, 2 }
 0x310   :  { %v2391_v24 = vunpack.c.l.b16 %v2348_v43  ;;  %v2302_v32 = vadd.f32 %v2301_v18, %v2300_v2  ;;  %v2294_v49 = vrot.slane %v2293_v54, 4  ;;  %v2048_v28 = vadd.f32 %v2047_v29, %v4143_v40 }
 0x311   :  { %v2064_v21 = vrot.slane %v4128_v35, 4  ;;  %v2390_v25 = vunpack.c.l.b16 %v2347_v0  ;;  %v2283_v33 = vadd.f32 %v2282_v42, %v2281_v23  ;;  %v2039_v10 = vadd.f32 %v2038_v58, %v4103_v7 }
 0x312   :  { %v2303_v63 = vrot.slane %v2302_v32, 2  ;;  %v2295_v26 = vadd.f32 %v2294_v49, %v2293_v54  ;;  %3201 = vrcp.f32 %v2048_v28  ;;  %v2058_v36 = vadd.f32 %v2057_v5, %v4136_v11  ;;  %v2189_v5 = vpop.permute.xlu1 %2188 }
 0x313   :  { %v2410_v38 = vsel %vm2409_vm6, %v2390_v25, %v2408_v47  ;;  %v2292_v41 = vadd.f32 %v2291_v15, %v2290_v57  ;;  %v2284_v9 = vrot.slane %v2283_v33, 1  ;;  %v2040_v40 = vrot.slane %v2039_v10, 1 }
 0x314   :  { %v2412_v61 = vsel %vm2411_vm7, %v2391_v24, %v2410_v38  ;;  %v2304_v53 = vadd.f32 %v2303_v63, %v2302_v32  ;;  %v2296_v19 = vrot.slane %v2295_v26, 2  ;;  %v2059_v1 = vrot.slane %v2058_v36, 2 }
 0x315   :  { %v2285_v52 = vadd.f32 %v2284_v9, %v2283_v33  ;;  %v2041_v7 = vadd.f32 %v2040_v40, %v2039_v10  ;;  %v2052_v58 = vrot.slane %v4118_v8, 2  ;;  %v2065_v11 = vadd.f32 %v2064_v21, %v4128_v35 }
 0x316   :  { %v2305_v20 = vrot.slane %v2304_v53, 1  ;;  %v2297_v45 = vadd.f32 %v2296_v19, %v2295_v26  ;;  %v2060_v14 = vadd.f32 %v2059_v1, %v2058_v36  ;;  %v2350_v44 = vpack.c.bf16 %v2292_v41, %v2292_v41  ;;  %v2191_v51 = vpop.permute.xlu1 %2190 }
 0x317   :  { %v2349_v39 = vpack.c.bf16 %v2285_v52, %v2285_v52  ;;  %3203 = vrcp.f32 %v2041_v7  ;;  %v2053_v46 = vadd.f32 %v2052_v58, %v4118_v8  ;;  %v2066_v37 = vrot.slane %v2065_v11, 2 }
 0x318   :  { %v2306_v13 = vadd.f32 %v2305_v20, %v2304_v53  ;;  %v2298_v55 = vrot.slane %v2297_v45, 1  ;;  %v2061_v17 = vrot.slane %v2060_v14, 1  ;;  %v2393_v27 = vunpack.c.l.b16 %v2350_v44 }
 0x319   :  { %v2392_v29 = vunpack.c.l.b16 %v2349_v39  ;;  %v2054_v3 = vrot.slane %v2053_v46, 1  ;;  %v2067_v56 = vadd.f32 %v2066_v37, %v2065_v11 }
 0x31a   :  { %v2352_v50 = vpack.c.bf16 %v2306_v13, %v2306_v13  ;;  %v2299_v12 = vadd.f32 %v2298_v55, %v2297_v45  ;;  %v2062_v48 = vadd.f32 %v2061_v17, %v2060_v14  ;;  %v2193_v15 = vpop.permute.xlu1 %2192 }
 0x31b   :  { %v4182_v2 = vsel %vm2413_vm8, %v2392_v29, %v2412_v61  ;;  %v2055_v35 = vadd.f32 %v2054_v3, %v2053_v46  ;;  %v2068_v22 = vrot.slane %v2067_v56, 1 }
 0x31c   :  { %v2351_v60 = vpack.c.bf16 %v2299_v12, %v2299_v12  ;;  %3205 = vrcp.f32 %v2062_v48  ;;  %v2395_v8 = vunpack.c.l.b16 %v2352_v50 }
 0x31d   :  { %3207 = vrcp.f32 %v2055_v35  ;;  %v2069_v23 = vadd.f32 %v2068_v22, %v2067_v56 }
 0x31e   :  { %v2394_v57 = vunpack.c.l.b16 %v2351_v60  ;;  %v2195_v33 = vpop.permute.xlu1 %2194 }
 0x31f   :  { %v3202_v62 = vpop.eup %3201  ;;  %3209 = vrcp.f32 %v2069_v23 }
 0x320   :  { %v2415_v43 = vsel %vm2401_vm2, %v2394_v57, %v2393_v27  ;;  %v2098_v18 = vmul.f32 %v3202_v62, %v4106_v31 }
 0x321   :  { %v4187_v54 = vsel %vm2403_vm3, %v2395_v8, %v2415_v43 }
 0x322   :  { %v2138_v0 = vsel %vm207_vm1, %v2098_v18, 0.0  ;;  %v2226_v47 = vmul.f32 %v2191_v51, %v2098_v18 }
 0x323   :  { %2139 = vadd.xlane.f32.xlu1 %v2138_v0 }
 0x324   :  { %v3204_v42 = vpop.eup %3203  ;;  %v2314_v24 = vsel %vm207_vm1, %v2226_v47, 0.0 }
 0x325   :  { %v2315_v32 = vrot.slane %v2314_v24, 4  ;;  %v2097_v49 = vmul.f32 %v3204_v42, %v4078_v30 }
 0x327   :  { %v2316_v28 = vadd.f32 %v2315_v32, %v2314_v24  ;;  %v2135_v21 = vsel %vm207_vm1, %v2097_v49, 0.0  ;;  %v2225_v25 = vmul.f32 %v2189_v5, %v2097_v49 }
 0x328   :  { %2136 = vadd.xlane.f32.xlu0 %v2135_v21 }
 0x329   :  { %v3206_v31 = vpop.eup %3205  ;;  %v2317_v10 = vrot.slane %v2316_v28, 2  ;;  %v2307_v63 = vsel %vm207_vm1, %v2225_v25, 0.0 }
 0x32a   :  { %v3208_v26 = vpop.eup %3207  ;;  %v2308_v36 = vrot.slane %v2307_v63, 4  ;;  %v2100_v38 = vmul.f32 %v3206_v31, %v4131_v4  ;;  %v2197_v4 = vpop.permute.xlu1 %2196 }
 0x32b   :  { %v2318_v41 = vadd.f32 %v2317_v10, %v2316_v28  ;;  %v2099_v9 = vmul.f32 %v3208_v26, %v4095_v16 }
 0x32c   :  { %v2309_v40 = vadd.f32 %v2308_v36, %v2307_v63  ;;  %v2144_v30 = vsel %vm207_vm1, %v2100_v38, 0.0  ;;  %v2228_v61 = vmul.f32 %v2195_v33, %v2100_v38  ;;  %v3210_v53 = vpop.eup %3209 }
 0x32d   :  { %v2319_v19 = vrot.slane %v2318_v41, 1  ;;  %2145 = vadd.xlane.f32.xlu1 %v2144_v30  ;;  %v2141_v1 = vsel %vm207_vm1, %v2099_v9, 0.0  ;;  %v2227_v52 = vmul.f32 %v2193_v15, %v2099_v9  ;;  %v2101_v20 = vmul.f32 %v3210_v53, %v4122_v59 }
 0x32e   :  { %v2310_v7 = vrot.slane %v2309_v40, 2  ;;  %v2328_v58 = vsel %vm207_vm1, %v2228_v61, 0.0  ;;  %2142 = vadd.xlane.f32.xlu0 %v2141_v1 }
 0x32f   :  { %v2320_v45 = vadd.f32 %v2319_v19, %v2318_v41  ;;  %v2329_v14 = vrot.slane %v2328_v58, 4  ;;  %v2321_v16 = vsel %vm207_vm1, %v2227_v52, 0.0  ;;  %v2229_v44 = vmul.f32 %v2197_v4, %v2101_v20 }
 0x330   :  { %v2311_v11 = vadd.f32 %v2310_v7, %v2309_v40  ;;  %v2322_v5 = vrot.slane %v2321_v16, 4  ;;  %v2147_v46 = vsel %vm207_vm1, %v2101_v20, 0.0  ;;  %v2645_v40 = vand.u32 127, %v4459_v34  ;;  %v2760_v7 = vld [vmem:[%s4451_s6] ss:$0 sm:$0xff] }
 0x331   :  { %v2330_v39 = vadd.f32 %v2329_v14, %v2328_v58  ;;  %v2335_v17 = vsel %vm207_vm1, %v2229_v44, 0.0  ;;  %v2354_v37 = vpack.c.bf16 %v2320_v45, %v2320_v45 }
 0x332   :  { %v2312_v13 = vrot.slane %v2311_v11, 1  ;;  %v2323_v55 = vadd.f32 %v2322_v5, %v2321_v16  ;;  %2148 = vadd.xlane.f32.xlu0 %v2147_v46  ;;  %v2336_v3 = vrot.slane %v2335_v17, 4  ;;  %v2646_v53 = vadd.s32 4294967264, %v2645_v40 }
 0x333   :  { %v2331_v29 = vrot.slane %v2330_v39, 2  ;;  %v2397_v27 = vunpack.c.l.b16 %v2354_v37  ;;  %v4460_v37 = vld [vmem:[#allocation2_spill] sm:$0xff] }
 0x334   :  { %v2313_v59 = vadd.f32 %v2312_v13, %v2311_v11  ;;  %v2324_v50 = vrot.slane %v2323_v55, 2  ;;  %v2337_v48 = vadd.f32 %v2336_v3, %v2335_v17  ;;  %v4277_v1 = vsub.s32 %v2646_v53, %v3266_v6 }
 0x335   :  { %v2332_v12 = vadd.f32 %v2331_v29, %v2330_v39 }
 0x336   :  { %v2353_v56 = vpack.c.bf16 %v2313_v59, %v2313_v59  ;;  %v2325_v35 = vadd.f32 %v2324_v50, %v2323_v55  ;;  %v2338_v22 = vrot.slane %v2337_v48, 2 }
 0x337   :  { %v2333_v60 = vrot.slane %v2332_v12, 1 }
 0x338   :  { %v2396_v51 = vunpack.c.l.b16 %v2353_v56  ;;  %v2326_v8 = vrot.slane %v2325_v35, 1  ;;  %v2339_v23 = vadd.f32 %v2338_v22, %v2337_v48 }
 0x339   :  { %v2334_v57 = vadd.f32 %v2333_v60, %v2332_v12 }
 0x33a   :  { %v2417_v62 = vsel %vm2405_vm4, %v2396_v51, %v4187_v54  ;;  %v2327_v43 = vadd.f32 %v2326_v8, %v2325_v35  ;;  %v2340_v47 = vrot.slane %v2339_v23, 1 }
 0x33b   :  { %v2356_v18 = vpack.c.bf16 %v2334_v57, %v2334_v57  ;;  %v2418_v0 = vsel %vm2407_vm5, %v2397_v27, %v2417_v62 }
 0x33c   :  { %v2355_v15 = vpack.c.bf16 %v2327_v43, %v2327_v43  ;;  %v2341_v24 = vadd.f32 %v2340_v47, %v2339_v23 }
 0x33d   :  { %v2399_v42 = vunpack.c.l.b16 %v2356_v18 }
 0x33e   :  { %v2398_v32 = vunpack.c.l.b16 %v2355_v15  ;;  %v2357_v49 = vpack.c.bf16 %v2341_v24, %v2341_v24 }
 0x340   :  { %v2419_v54 = vsel %vm2409_vm6, %v2398_v32, %v2418_v0  ;;  %v2400_v28 = vunpack.c.l.b16 %v2357_v49 }
 0x341   :  { %v2420_v21 = vsel %vm2411_vm7, %v2399_v42, %v2419_v54 }
 0x342   :  { %v2421_v25 = vsel %vm2413_vm8, %v2400_v28, %v2420_v21 }
 0x343   :  { %v2422_v31 = vpack.c.b16 %v2421_v25, %v4182_v2 }
 0x345   :  { %3135 = vmatmul.mubr.msk.bf16.vlgmr.msra.gmra.mxu1 %vm207_vm1, %v2422_v31 }
 0x37a   :  { %v2107_v63 = vpop.xlane.xlu1 %2106 }
 0x37b   :  { %v2151_v2 = vmul.f32 0.03125, %v2107_v63 }
 0x37c   :  { %v2104_v33 = vpop.xlane.xlu0 %2103 }
 0x37d   :  { %v2150_v58 = vmul.f32 0.03125, %v2104_v33  ;;  %v2654_v11 = vrot.slane %v2151_v2, %v4277_v1 }
 0x37f   :  { %v2650_v13 = vrot.slane %v2150_v58, %v4277_v1 }
 0x380   :  { %v2113_v10 = vpop.xlane.xlu0 %2112  ;;  %v2116_v36 = vpop.xlane.xlu1 %2115 }
 0x381   :  { %v4282_v20 = vmul.f32 0.03125, %v2113_v10  ;;  %v2154_v4 = vmul.f32 0.03125, %v2116_v36 }
 0x383   :  { %v2662_v55 = vrot.slane %v4282_v20, %v4277_v1  ;;  %v2666_v3 = vrot.slane %v2154_v4, %v4277_v1 }
 0x384   :  { %v2110_v26 = vpop.xlane.xlu0 %2109 }
 0x385   :  { %v2152_v45 = vmul.f32 0.03125, %v2110_v26 }
 0x387   :  { %v2658_v59 = vrot.slane %v2152_v45, %v4277_v1 }
 0x388   :  { %v2122_v41 = vpop.xlane.xlu1 %2121 }
 0x389   :  { %v2156_v5 = vmul.f32 0.03125, %v2122_v41 }
 0x38a   :  { %v2119_v38 = vpop.xlane.xlu0 %2118 }
 0x38b   :  { %v2155_v44 = vmul.f32 0.03125, %v2119_v38  ;;  %v2674_v60 = vrot.slane %v2156_v5, %v4277_v1 }
 0x38d   :  { %v2670_v22 = vrot.slane %v2155_v44, %v4277_v1 }
 0x38e   :  { %v2128_v30 = vpop.xlane.xlu1 %2127 }
 0x38f   :  { %v4285_v39 = vmul.f32 0.03125, %v2128_v30 }
 0x391   :  { %v2682_v51 = vrot.slane %v4285_v39, %v4277_v1 }
 0x392   :  { %v2125_v9 = vpop.xlane.xlu0 %2124 }
 0x393   :  { %v2134_v19 = vpop.xlane.xlu1 %2133  ;;  %v2157_v8 = vmul.f32 0.03125, %v2125_v9 }
 0x394   :  { %v2160_v0 = vmul.f32 0.03125, %v2134_v19 }
 0x395   :  { %v2678_v21 = vrot.slane %v2157_v8, %v4277_v1 }
 0x396   :  { %v2131_v61 = vpop.xlane.xlu0 %2130  ;;  %v2690_v30 = vrot.slane %v2160_v0, %v4277_v1 }
 0x397   :  { %v2159_v47 = vmul.f32 0.03125, %v2131_v61 }
 0x399   :  { %v2686_v61 = vrot.slane %v2159_v47, %v4277_v1 }
 0x3ac   :  { %v2140_v6 = vpop.xlane.xlu1 %2139 }
 0x3ad   :  { %v2162_v32 = vmul.f32 0.03125, %v2140_v6 }
 0x3af   :  { %v2698_v53 = vrot.slane %v2162_v32, %v4277_v1 }
 0x3b1   :  { %v2137_v52 = vpop.xlane.xlu0 %2136 }
 0x3b2   :  { %v2161_v63 = vmul.f32 0.03125, %v2137_v52 }
 0x3b4   :  { %v2694_v58 = vrot.slane %v2161_v63, %v4277_v1 }
 0x3b6   :  { %v2146_v15 = vpop.xlane.xlu1 %2145 }
 0x3b7   :  { %v2143_v50 = vpop.xlane.xlu0 %2142  ;;  %v2164_v26 = vmul.f32 0.03125, %v2146_v15 }
 0x3b8   :  { %v2163_v36 = vmul.f32 0.03125, %v2143_v50 }
 0x3b9   :  { %v2706_v20 = vrot.slane %v2164_v26, %v4277_v1 }
 0x3ba   :  { %v2702_v4 = vrot.slane %v2163_v36, %v4277_v1 }
 0x3bb   :  { %v2149_v25 = vpop.xlane.xlu0 %2148 }
 0x3bc   :  { %v2165_v19 = vmul.f32 0.03125, %v2149_v25 }
 0x405   :  { %v2472_v14 = vpop.f32.mrf.mxu1 }
 0x406   :  { %v2473_v16 = vadd.f32 %v2760_v7, %v2472_v14  ;;  %v2710_v14 = vrot.slane %v2165_v19, %v4277_v1 }
 0x407   :  { %v3136_v46 = vpop.f32.mrf.mxu1 }
 0x408   :  { %v2497_v17 = vcombine.high %v2473_v16, %v2473_v16  ;;  %v2504_v29 = vrot.slane %v2473_v16, %v4460_v37 }
 0x409   :  { %v2475_v12 = vpop.f32.mrf.mxu1 }
 0x40a   :  { %v2511_v48 = vrot.slane %v2497_v17, %v4460_v37  ;;  %v2512_v56 = vcombine.high %v2504_v29, %v2504_v29  ;;  %v2520_v35 = vrot.slane %v2504_v29, %v4460_v37  ;;  %v2476_v27 = vadd.f32 %v2760_v7, %v2475_v12 }
 0x40b   :  { %v3137_v57 = vpop.f32.mrf.mxu1 }
 0x40c   :  { %v2513_v23 = vcombine.high %v2511_v48, %v2511_v48  ;;  %v2527_v62 = vrot.slane %v2511_v48, %v4460_v37  ;;  %v2534_v43 = vrot.slane %v2512_v56, %v4460_v37  ;;  %v2542_v18 = vcombine.high %v2520_v35, %v2520_v35  ;;  %2612 = vst.msk [vmem:[%s4450_s7] sm:$0x1] %vm2611_vm9, %v2520_v35 }
 0x40d   :  { %2728 = vst.msk [vmem:[%s4450_s7] sm:$0x1] %vm2727_vm10, %v2650_v13  ;;  %v2546_v42 = vcombine.high %v2476_v27, %v2476_v27  ;;  %v2553_v24 = vrot.slane %v2476_v27, %v4460_v37 }
 0x40e   :  { %v2541_v49 = vrot.slane %v2513_v23, %v4460_v37  ;;  %v2543_v54 = vcombine.high %v2527_v62, %v2527_v62  ;;  %v2544_v28 = vcombine.high %v2534_v43, %v2534_v43  ;;  %2613 = vst.msk [vmem:[%s4450_s7 + $0x1] sm:$0x1] %vm2611_vm9, %v2534_v43  ;;  %2614 = vst.msk [vmem:[%s4450_s7 + $0x2] sm:$0x1] %vm2611_vm9, %v2542_v18 }
 0x40f   :  { %2616 = vst.msk [vmem:[%s4450_s7 + $0x4] sm:$0x1] %vm2611_vm9, %v2527_v62  ;;  %v2560_v31 = vrot.slane %v2546_v42, %v4460_v37  ;;  %v2561_v33 = vcombine.high %v2553_v24, %v2553_v24  ;;  %v2569_v10 = vrot.slane %v2553_v24, %v4460_v37 }
 0x410   :  { %2729 = vst.msk [vmem:[%s4450_s7 + $0x1] sm:$0x1] %vm2727_vm10, %v2654_v11  ;;  %2730 = vst.msk [vmem:[%s4450_s7 + $0x2] sm:$0x1] %vm2727_vm10, %v2658_v59  ;;  %v2545_v38 = vcombine.high %v2541_v49, %v2541_v49 }
 0x411   :  { %2732 = vst.msk [vmem:[%s4450_s7 + $0x4] sm:$0x1] %vm2727_vm10, %v2666_v3  ;;  %v2562_v41 = vcombine.high %v2560_v31, %v2560_v31  ;;  %v2576_v9 = vrot.slane %v2560_v31, %v4460_v37  ;;  %v2583_v34 = vrot.slane %v2561_v33, %v4460_v37  ;;  %v2591_v40 = vcombine.high %v2569_v10, %v2569_v10 }
 0x412   :  { %2615 = vst.msk [vmem:[%s4450_s7 + $0x3] sm:$0x1] %vm2611_vm9, %v2544_v28  ;;  %2617 = vst.msk [vmem:[%s4450_s7 + $0x5] sm:$0x1] %vm2611_vm9, %v2541_v49 }
 0x413   :  { %2618 = vst.msk [vmem:[%s4450_s7 + $0x6] sm:$0x1] %vm2611_vm9, %v2543_v54  ;;  %2620 = vst.msk [vmem:[%s4450_s7 + $0x8] sm:$0x1] %vm2611_vm9, %v2569_v10  ;;  %v2590_v2 = vrot.slane %v2562_v41, %v4460_v37  ;;  %v2592_v52 = vcombine.high %v2576_v9, %v2576_v9  ;;  %v2593_v7 = vcombine.high %v2583_v34, %v2583_v34 }
 0x414   :  { %2731 = vst.msk [vmem:[%s4450_s7 + $0x3] sm:$0x1] %vm2727_vm10, %v2662_v55  ;;  %2733 = vst.msk [vmem:[%s4450_s7 + $0x5] sm:$0x1] %vm2727_vm10, %v2670_v22 }
 0x415   :  { %2734 = vst.msk [vmem:[%s4450_s7 + $0x6] sm:$0x1] %vm2727_vm10, %v2674_v60  ;;  %2736 = vst.msk [vmem:[%s4450_s7 + $0x8] sm:$0x1] %vm2727_vm10, %v2682_v51  ;;  %v2594_v45 = vcombine.high %v2590_v2, %v2590_v2 }
 0x416   :  { %2619 = vst.msk [vmem:[%s4450_s7 + $0x7] sm:$0x1] %vm2611_vm9, %v2545_v38  ;;  %2621 = vst.msk [vmem:[%s4450_s7 + $0x9] sm:$0x1] %vm2611_vm9, %v2583_v34 }
 0x417   :  { %2735 = vst.msk [vmem:[%s4450_s7 + $0x7] sm:$0x1] %vm2727_vm10, %v2678_v21  ;;  %2737 = vst.msk [vmem:[%s4450_s7 + $0x9] sm:$0x1] %vm2727_vm10, %v2686_v61 }
 0x418   :  { %2622 = vst.msk [vmem:[%s4450_s7 + $0xa] sm:$0x1] %vm2611_vm9, %v2591_v40  ;;  %2624 = vst.msk [vmem:[%s4450_s7 + $0xc] sm:$0x1] %vm2611_vm9, %v2576_v9 }
 0x419   :  { %2738 = vst.msk [vmem:[%s4450_s7 + $0xa] sm:$0x1] %vm2727_vm10, %v2690_v30  ;;  %2740 = vst.msk [vmem:[%s4450_s7 + $0xc] sm:$0x1] %vm2727_vm10, %v2698_v53 }
 0x41a   :  { %2623 = vst.msk [vmem:[%s4450_s7 + $0xb] sm:$0x1] %vm2611_vm9, %v2593_v7  ;;  %2625 = vst.msk [vmem:[%s4450_s7 + $0xd] sm:$0x1] %vm2611_vm9, %v2590_v2 }
 0x41b   :  { %2626 = vst.msk [vmem:[%s4450_s7 + $0xe] sm:$0x1] %vm2611_vm9, %v2592_v52  ;;  %2627 = vst.msk [vmem:[%s4450_s7 + $0xf] sm:$0x1] %vm2611_vm9, %v2594_v45 }
 0x41c   :  { %2739 = vst.msk [vmem:[%s4450_s7 + $0xb] sm:$0x1] %vm2727_vm10, %v2694_v58  ;;  %2741 = vst.msk [vmem:[%s4450_s7 + $0xd] sm:$0x1] %vm2727_vm10, %v2702_v4 }
 0x41d   :  { %2742 = vst.msk [vmem:[%s4450_s7 + $0xe] sm:$0x1] %vm2727_vm10, %v2706_v20  ;;  %2743 = vst.msk [vmem:[%s4450_s7 + $0xf] sm:$0x1] %vm2727_vm10, %v2710_v14 }

</bundles_post_ra>
